<compile_context>
chip_gen: v7x
topology: tpu7x:2x2x1
jax: 0.10.0
libtpu: 0.0.40
codegen_flags: <defaults>
</compile_context>

<pallas_src>
import jax
import jax.numpy as jnp
from jax.experimental import pallas as pl
from jax.experimental.pallas import tpu as pltpu

h_dims = [32, 64, 64, 128, 128, 256, 256, 512]
_EPS = 1e-5
_UPSAMPLE_FLAGS = (False, True, True, True, False)   # block1, 2, 4, 6, 9


def _make_fused_kernel(nb, hw):
    """Kernel factory: nb samples per grid step, hw pixels per sample."""
    hw_inv = 1.0 / hw

    def kernel(x_ref, w1_ref, w2_ref, w3_ref, w4_ref, w5_ref, o_ref):
        # x_ref: (Cin, nb*hw) f32.  Samples lie contiguously along the lane
        # axis, so matmuls, norm reductions and the final store are lane-dense.
        a = x_ref[...]
        for w_ref in (w1_ref, w2_ref, w3_ref, w4_ref, w5_ref):    # unrolled
            w = w_ref[...]                                        # (Cout, Cin) bf16
            # 1x1 conv == channel matmul: bf16 MXU inputs, f32 accumulation.
            y = jnp.dot(w, a.astype(jnp.bfloat16),
                        preferred_element_type=jnp.float32)       # (Cout, nb*hw)
            # Per-sample InstanceNorm(affine=False) + ReLU, all in f32.
            pieces = []
            for s in range(nb):                                   # static slices
                ys = y[:, s * hw:(s + 1) * hw]                    # (Cout, hw)
                mean = jnp.sum(ys, axis=-1, keepdims=True) * hw_inv
                d = ys - mean
                var = jnp.sum(d * d, axis=-1, keepdims=True) * hw_inv
                pieces.append(jnp.maximum(d * jax.lax.rsqrt(var + _EPS), 0.0))
            a = pieces[0] if nb == 1 else jnp.concatenate(pieces, axis=-1)
        o_ref[...] = a
        # TODO(synk): for very large HW, accumulate sum/sumsq over HW chunks (or
        # add an "arbitrary" HW grid axis with a two-pass InstanceNorm) so the
        # widest (256, nb*hw) f32 temp stops driving peak VMEM; optionally route
        # the per-channel reductions through the MXU (dot against a block-ones
        # column) if the VALU/XLU slot becomes the bottleneck post-bf16.

    return kernel


def _pick_block_batch(n, hw, lane_target=2048):
    """Largest divisor of n with nb*hw <= lane_target, keeping >= 2 grid steps."""
    nb = 1
    for cand in range(1, n + 1):
        if n % cand:
            continue
        if cand * hw > lane_target:
            break
        if n >= 2 and (n // cand) < 2:      # keep both v7x TensorCores busy
            continue
        nb = cand
    return nb


def _vmem_limit_bytes(cin, cout, widest, lanes, w_bytes):
    act = 4 * lanes * 4 * widest                  # f32 activation temps (y, d, a, cast)
    io = 2 * 4 * lanes * (cin + cout)             # double-buffered I/O tiles
    need = act + io + 2 * w_bytes + (4 << 20)     # + compiler scratch headroom
    try:
        cap = int(pltpu.get_tpu_info().vmem_capacity_bytes)
    except Exception:                             # not a TPU / older jax
        cap = 64 * 2**20                          # assume the smaller (v7x) part
    # ~40 MiB ceiling on 64 MiB VMEM (v7x), ~96 MiB on 128 MiB (v5e/v6e).
    ceiling = max(16 * 2**20, min(3 * cap // 4, cap - 24 * 2**20))
    return int(min(max(need, 16 * 2**20), ceiling))


def unet_decoder_half(x_nchw, params):
    """x_nchw: (N, Cin, H, W) f32 NCHW -> (N, out_dim, 8H, 8W) f32 NCHW."""
    N, Cin, H, W = x_nchw.shape
    HW = H * W
    ws = [w.astype(jnp.bfloat16) for (w, _b) in params]   # bias cancels under IN
    Cout = ws[-1].shape[0]
    widest = max(w.shape[0] for w in ws)

    nb = _pick_block_batch(N, HW)
    lanes = nb * HW
    grid = (N // nb,)
    # TODO(synk): if N == 1 and HW is large, split the HW axis into a leading
    # parallel grid dim of size 2 so both v7x TensorCores are used.

    # Batch merged onto the lane axis: (N, Cin, HW) -> (Cin, N*HW) (tiny XLA op).
    x_flat = x_nchw.reshape(N, Cin, HW).transpose(1, 0, 2).reshape(Cin, N * HW)

    w_bytes = 2 * sum(w.size for w in ws)
    vmem_bytes = _vmem_limit_bytes(Cin, Cout, widest, lanes, w_bytes)

    out = pl.pallas_call(
        _make_fused_kernel(nb, HW),
        out_shape=jax.ShapeDtypeStruct((Cout, N * HW), jnp.float32),
        grid_spec=pltpu.PrefetchScalarGridSpec(
            num_scalar_prefetch=0,
            grid=grid,
            in_specs=[pl.BlockSpec((Cin, lanes), lambda g: (0, g))]
                    + [pl.BlockSpec(w.shape, lambda g: (0, 0)) for w in ws],
            out_specs=pl.BlockSpec((Cout, lanes), lambda g: (0, g)),
        ),
        compiler_params=pltpu.CompilerParams(
            dimension_semantics=("parallel",),
            vmem_limit_bytes=vmem_bytes),
    )(x_flat, *ws)

    out = out.reshape(Cout, N, HW).transpose(1, 0, 2).reshape(N, Cout, H, W)
    # Deferred upsample: three nearest-2x == one nearest-8x, as a single
    # broadcast + reshape (one HBM write of the 64x-area tensor, no chained repeats).
    f = 2 ** sum(_UPSAMPLE_FLAGS)
    out = jnp.broadcast_to(out[:, :, :, None, :, None], (N, Cout, H, f, W, f))
    return out.reshape(N, Cout, H * f, W * f)


def _reference(x_nchw, params):
    """Pure-JAX f32 reference in the ORIGINAL interleaved form (with bias):
    conv(1x1)+b -> InstanceNorm(affine=False) -> ReLU -> optional 2x nearest."""
    out = x_nchw
    for (w, b), up in zip(params, _UPSAMPLE_FLAGS):
        y = jnp.einsum('oc,nchw->nohw', w, out) + b[None, :, None, None]
        mean = jnp.mean(y, axis=(2, 3), keepdims=True)
        var = jnp.mean(jnp.square(y - mean), axis=(2, 3), keepdims=True)
        y = jnp.maximum((y - mean) * jax.lax.rsqrt(var + _EPS), 0.0)
        if up:
            y = jnp.repeat(jnp.repeat(y, 2, axis=2), 2, axis=3)
        out = y
    return out


def init_params(key, input_ch, out_dim):
    """PyTorch Conv-style init: uniform(+-1/sqrt(fan_in)); weight is (Cout, Cin)."""
    chans = [input_ch, h_dims[6], h_dims[4], h_dims[2], h_dims[0], out_dim]
    params = []
    for cin, cout in zip(chans[:-1], chans[1:]):
        key, kw, kb = jax.random.split(key, 3)
        bound = 1.0 / (cin ** 0.5)
        w = jax.random.uniform(kw, (cout, cin), jnp.float32, -bound, bound)
        b = jax.random.uniform(kb, (cout,), jnp.float32, -bound, bound)
        params.append((w, b))
    return params, key


if __name__ == "__main__":
    # Small shapes: batch=2, input_ch=4, spatial 16x16 (HW=256, lane-friendly).
    N, H, W = 2, 16, 16
    input_ch, out_dim = 4, 3

    key = jax.random.PRNGKey(0)
    params, key = init_params(key, input_ch, out_dim)
    key, kx = jax.random.split(key)
    x = jax.random.normal(kx, (N, input_ch, H, W), dtype=jnp.float32)   # NCHW

    out = jax.block_until_ready(unet_decoder_half(x, params))

    # Channel flow 4 -> 256 -> 128 -> 64 -> 32 -> 3; spatial x8 (3 deferred 2x ups).
    assert out.shape == (N, out_dim, H * 8, W * 8), out.shape
    assert out.dtype == jnp.float32

    ref = jax.block_until_ready(_reference(x, params))
    # bf16 MXU inputs across 5 normalized layers give ~1e-2-scale deviations vs
    # the all-f32 reference on unit-scale (InstanceNorm'd) outputs.
    assert bool(jnp.allclose(out, ref, atol=5e-2, rtol=5e-2)), (
        float(jnp.max(jnp.abs(out - ref))))

    # TODO(synk): `layers.ConvBlockUp` source not provided; block assumed to be
    # Conv(k=1) -> InstanceNorm(affine=False, eps=1e-5) -> ReLU -> nearest 2x.
    print("KERNEL_OK")
</pallas_src>

<mosaic_0001>
module attributes {stable_mosaic.version = 11 : i64} {
  func.func @kernel(%arg0: i32, %arg1: memref<4x256xf32, #tpu.memory_space<vmem>>, %arg2: memref<256x4xbf16, #tpu.memory_space<vmem>>, %arg3: memref<128x256xbf16, #tpu.memory_space<vmem>>, %arg4: memref<64x128xbf16, #tpu.memory_space<vmem>>, %arg5: memref<32x64xbf16, #tpu.memory_space<vmem>>, %arg6: memref<3x32xbf16, #tpu.memory_space<vmem>>, %arg7: memref<3x256xf32, #tpu.memory_space<vmem>>) attributes {dimension_semantics = [#tpu.dimension_semantics<parallel>], iteration_bounds = array<i64: 2>, scalar_prefetch = 0 : i64, scratch_operands = 0 : i64, tpu.core_type = #tpu.core_type<tc>, window_params = [{transform_indices = @transform_0, window_bounds = array<i64: 4, 256>}, {pipeline_mode = #tpu.pipeline_mode<synchronous>, transform_indices = @transform_1, window_bounds = array<i64: 256, 4>}, {pipeline_mode = #tpu.pipeline_mode<synchronous>, transform_indices = @transform_2, window_bounds = array<i64: 128, 256>}, {pipeline_mode = #tpu.pipeline_mode<synchronous>, transform_indices = @transform_3, window_bounds = array<i64: 64, 128>}, {pipeline_mode = #tpu.pipeline_mode<synchronous>, transform_indices = @transform_4, window_bounds = array<i64: 32, 64>}, {pipeline_mode = #tpu.pipeline_mode<synchronous>, transform_indices = @transform_5, window_bounds = array<i64: 3, 32>}, {transform_indices = @transform_6, window_bounds = array<i64: 3, 256>}]} {
    %c0 = arith.constant 0 : index
    %c0_0 = arith.constant 0 : index
    %0 = vector.load %arg1[%c0, %c0_0] : memref<4x256xf32, #tpu.memory_space<vmem>>, vector<4x256xf32>
    %c0_1 = arith.constant 0 : index
    %c0_2 = arith.constant 0 : index
    %1 = vector.load %arg2[%c0_1, %c0_2] : memref<256x4xbf16, #tpu.memory_space<vmem>>, vector<256x4xbf16>
    %2 = arith.truncf %0 : vector<4x256xf32> to vector<4x256xbf16>
    %cst = arith.constant dense<0.000000e+00> : vector<256x256xf32>
    %3 = tpu.matmul %1, %2, %cst {dimension_numbers = #tpu.dot_dimension_numbers<[1], [0], [0], [1], [0, 0, 1, 1], [], []>} : vector<256x4xbf16>, vector<4x256xbf16>, vector<256x256xf32> -> vector<256x256xf32>
    %cst_3 = arith.constant dense<0.000000e+00> : vector<256xf32>
    %4 = vector.multi_reduction <add>, %3, %cst_3 [1] : vector<256x256xf32> to vector<256xf32>
    %5 = vector.shape_cast %4 : vector<256xf32> to vector<256x1xf32>
    %cst_4 = arith.constant 3.906250e-03 : f32
    %6 = vector.broadcast %cst_4 : f32 to vector<256x1xf32>
    %7 = arith.mulf %5, %6 : vector<256x1xf32>
    %8 = vector.broadcast %7 : vector<256x1xf32> to vector<256x256xf32>
    %9 = arith.subf %3, %8 : vector<256x256xf32>
    %10 = arith.mulf %9, %9 : vector<256x256xf32>
    %cst_5 = arith.constant dense<0.000000e+00> : vector<256xf32>
    %11 = vector.multi_reduction <add>, %10, %cst_5 [1] : vector<256x256xf32> to vector<256xf32>
    %12 = vector.shape_cast %11 : vector<256xf32> to vector<256x1xf32>
    %cst_6 = arith.constant 3.906250e-03 : f32
    %13 = vector.broadcast %cst_6 : f32 to vector<256x1xf32>
    %14 = arith.mulf %12, %13 : vector<256x1xf32>
    %cst_7 = arith.constant 9.99999974E-6 : f32
    %15 = vector.broadcast %cst_7 : f32 to vector<256x1xf32>
    %16 = arith.addf %14, %15 : vector<256x1xf32>
    %17 = math.rsqrt %16 : vector<256x1xf32>
    %18 = vector.broadcast %17 : vector<256x1xf32> to vector<256x256xf32>
    %19 = arith.mulf %9, %18 : vector<256x256xf32>
    %cst_8 = arith.constant 0.000000e+00 : f32
    %20 = vector.broadcast %cst_8 : f32 to vector<256x256xf32>
    %21 = arith.maximumf %19, %20 : vector<256x256xf32>
    %c0_9 = arith.constant 0 : index
    %c0_10 = arith.constant 0 : index
    %22 = vector.load %arg3[%c0_9, %c0_10] : memref<128x256xbf16, #tpu.memory_space<vmem>>, vector<128x256xbf16>
    %23 = arith.truncf %21 : vector<256x256xf32> to vector<256x256xbf16>
    %cst_11 = arith.constant dense<0.000000e+00> : vector<128x256xf32>
    %24 = tpu.matmul %22, %23, %cst_11 {dimension_numbers = #tpu.dot_dimension_numbers<[1], [0], [0], [1], [0, 0, 1, 1], [], []>} : vector<128x256xbf16>, vector<256x256xbf16>, vector<128x256xf32> -> vector<128x256xf32>
    %cst_12 = arith.constant dense<0.000000e+00> : vector<128xf32>
    %25 = vector.multi_reduction <add>, %24, %cst_12 [1] : vector<128x256xf32> to vector<128xf32>
    %26 = vector.shape_cast %25 : vector<128xf32> to vector<128x1xf32>
    %cst_13 = arith.constant 3.906250e-03 : f32
    %27 = vector.broadcast %cst_13 : f32 to vector<128x1xf32>
    %28 = arith.mulf %26, %27 : vector<128x1xf32>
    %29 = vector.broadcast %28 : vector<128x1xf32> to vector<128x256xf32>
    %30 = arith.subf %24, %29 : vector<128x256xf32>
    %31 = arith.mulf %30, %30 : vector<128x256xf32>
    %cst_14 = arith.constant dense<0.000000e+00> : vector<128xf32>
    %32 = vector.multi_reduction <add>, %31, %cst_14 [1] : vector<128x256xf32> to vector<128xf32>
    %33 = vector.shape_cast %32 : vector<128xf32> to vector<128x1xf32>
    %cst_15 = arith.constant 3.906250e-03 : f32
    %34 = vector.broadcast %cst_15 : f32 to vector<128x1xf32>
    %35 = arith.mulf %33, %34 : vector<128x1xf32>
    %cst_16 = arith.constant 9.99999974E-6 : f32
    %36 = vector.broadcast %cst_16 : f32 to vector<128x1xf32>
    %37 = arith.addf %35, %36 : vector<128x1xf32>
    %38 = math.rsqrt %37 : vector<128x1xf32>
    %39 = vector.broadcast %38 : vector<128x1xf32> to vector<128x256xf32>
    %40 = arith.mulf %30, %39 : vector<128x256xf32>
    %cst_17 = arith.constant 0.000000e+00 : f32
    %41 = vector.broadcast %cst_17 : f32 to vector<128x256xf32>
    %42 = arith.maximumf %40, %41 : vector<128x256xf32>
    %c0_18 = arith.constant 0 : index
    %c0_19 = arith.constant 0 : index
    %43 = vector.load %arg4[%c0_18, %c0_19] : memref<64x128xbf16, #tpu.memory_space<vmem>>, vector<64x128xbf16>
    %44 = arith.truncf %42 : vector<128x256xf32> to vector<128x256xbf16>
    %cst_20 = arith.constant dense<0.000000e+00> : vector<64x256xf32>
    %45 = tpu.matmul %43, %44, %cst_20 {dimension_numbers = #tpu.dot_dimension_numbers<[1], [0], [0], [1], [0, 0, 1, 1], [], []>} : vector<64x128xbf16>, vector<128x256xbf16>, vector<64x256xf32> -> vector<64x256xf32>
    %cst_21 = arith.constant dense<0.000000e+00> : vector<64xf32>
    %46 = vector.multi_reduction <add>, %45, %cst_21 [1] : vector<64x256xf32> to vector<64xf32>
    %47 = vector.shape_cast %46 : vector<64xf32> to vector<64x1xf32>
    %cst_22 = arith.constant 3.906250e-03 : f32
    %48 = vector.broadcast %cst_22 : f32 to vector<64x1xf32>
    %49 = arith.mulf %47, %48 : vector<64x1xf32>
    %50 = vector.broadcast %49 : vector<64x1xf32> to vector<64x256xf32>
    %51 = arith.subf %45, %50 : vector<64x256xf32>
    %52 = arith.mulf %51, %51 : vector<64x256xf32>
    %cst_23 = arith.constant dense<0.000000e+00> : vector<64xf32>
    %53 = vector.multi_reduction <add>, %52, %cst_23 [1] : vector<64x256xf32> to vector<64xf32>
    %54 = vector.shape_cast %53 : vector<64xf32> to vector<64x1xf32>
    %cst_24 = arith.constant 3.906250e-03 : f32
    %55 = vector.broadcast %cst_24 : f32 to vector<64x1xf32>
    %56 = arith.mulf %54, %55 : vector<64x1xf32>
    %cst_25 = arith.constant 9.99999974E-6 : f32
    %57 = vector.broadcast %cst_25 : f32 to vector<64x1xf32>
    %58 = arith.addf %56, %57 : vector<64x1xf32>
    %59 = math.rsqrt %58 : vector<64x1xf32>
    %60 = vector.broadcast %59 : vector<64x1xf32> to vector<64x256xf32>
    %61 = arith.mulf %51, %60 : vector<64x256xf32>
    %cst_26 = arith.constant 0.000000e+00 : f32
    %62 = vector.broadcast %cst_26 : f32 to vector<64x256xf32>
    %63 = arith.maximumf %61, %62 : vector<64x256xf32>
    %c0_27 = arith.constant 0 : index
    %c0_28 = arith.constant 0 : index
    %64 = vector.load %arg5[%c0_27, %c0_28] : memref<32x64xbf16, #tpu.memory_space<vmem>>, vector<32x64xbf16>
    %65 = arith.truncf %63 : vector<64x256xf32> to vector<64x256xbf16>
    %cst_29 = arith.constant dense<0.000000e+00> : vector<32x256xf32>
    %66 = tpu.matmul %64, %65, %cst_29 {dimension_numbers = #tpu.dot_dimension_numbers<[1], [0], [0], [1], [0, 0, 1, 1], [], []>} : vector<32x64xbf16>, vector<64x256xbf16>, vector<32x256xf32> -> vector<32x256xf32>
    %cst_30 = arith.constant dense<0.000000e+00> : vector<32xf32>
    %67 = vector.multi_reduction <add>, %66, %cst_30 [1] : vector<32x256xf32> to vector<32xf32>
    %68 = vector.shape_cast %67 : vector<32xf32> to vector<32x1xf32>
    %cst_31 = arith.constant 3.906250e-03 : f32
    %69 = vector.broadcast %cst_31 : f32 to vector<32x1xf32>
    %70 = arith.mulf %68, %69 : vector<32x1xf32>
    %71 = vector.broadcast %70 : vector<32x1xf32> to vector<32x256xf32>
    %72 = arith.subf %66, %71 : vector<32x256xf32>
    %73 = arith.mulf %72, %72 : vector<32x256xf32>
    %cst_32 = arith.constant dense<0.000000e+00> : vector<32xf32>
    %74 = vector.multi_reduction <add>, %73, %cst_32 [1] : vector<32x256xf32> to vector<32xf32>
    %75 = vector.shape_cast %74 : vector<32xf32> to vector<32x1xf32>
    %cst_33 = arith.constant 3.906250e-03 : f32
    %76 = vector.broadcast %cst_33 : f32 to vector<32x1xf32>
    %77 = arith.mulf %75, %76 : vector<32x1xf32>
    %cst_34 = arith.constant 9.99999974E-6 : f32
    %78 = vector.broadcast %cst_34 : f32 to vector<32x1xf32>
    %79 = arith.addf %77, %78 : vector<32x1xf32>
    %80 = math.rsqrt %79 : vector<32x1xf32>
    %81 = vector.broadcast %80 : vector<32x1xf32> to vector<32x256xf32>
    %82 = arith.mulf %72, %81 : vector<32x256xf32>
    %cst_35 = arith.constant 0.000000e+00 : f32
    %83 = vector.broadcast %cst_35 : f32 to vector<32x256xf32>
    %84 = arith.maximumf %82, %83 : vector<32x256xf32>
    %c0_36 = arith.constant 0 : index
    %c0_37 = arith.constant 0 : index
    %85 = vector.load %arg6[%c0_36, %c0_37] : memref<3x32xbf16, #tpu.memory_space<vmem>>, vector<3x32xbf16>
    %86 = arith.truncf %84 : vector<32x256xf32> to vector<32x256xbf16>
    %cst_38 = arith.constant dense<0.000000e+00> : vector<3x256xf32>
    %87 = tpu.matmul %85, %86, %cst_38 {dimension_numbers = #tpu.dot_dimension_numbers<[1], [0], [0], [1], [0, 0, 1, 1], [], []>} : vector<3x32xbf16>, vector<32x256xbf16>, vector<3x256xf32> -> vector<3x256xf32>
    %cst_39 = arith.constant dense<0.000000e+00> : vector<3xf32>
    %88 = vector.multi_reduction <add>, %87, %cst_39 [1] : vector<3x256xf32> to vector<3xf32>
    %89 = vector.shape_cast %88 : vector<3xf32> to vector<3x1xf32>
    %cst_40 = arith.constant 3.906250e-03 : f32
    %90 = vector.broadcast %cst_40 : f32 to vector<3x1xf32>
    %91 = arith.mulf %89, %90 : vector<3x1xf32>
    %92 = vector.broadcast %91 : vector<3x1xf32> to vector<3x256xf32>
    %93 = arith.subf %87, %92 : vector<3x256xf32>
    %94 = arith.mulf %93, %93 : vector<3x256xf32>
    %cst_41 = arith.constant dense<0.000000e+00> : vector<3xf32>
    %95 = vector.multi_reduction <add>, %94, %cst_41 [1] : vector<3x256xf32> to vector<3xf32>
    %96 = vector.shape_cast %95 : vector<3xf32> to vector<3x1xf32>
    %cst_42 = arith.constant 3.906250e-03 : f32
    %97 = vector.broadcast %cst_42 : f32 to vector<3x1xf32>
    %98 = arith.mulf %96, %97 : vector<3x1xf32>
    %cst_43 = arith.constant 9.99999974E-6 : f32
    %99 = vector.broadcast %cst_43 : f32 to vector<3x1xf32>
    %100 = arith.addf %98, %99 : vector<3x1xf32>
    %101 = math.rsqrt %100 : vector<3x1xf32>
    %102 = vector.broadcast %101 : vector<3x1xf32> to vector<3x256xf32>
    %103 = arith.mulf %93, %102 : vector<3x256xf32>
    %cst_44 = arith.constant 0.000000e+00 : f32
    %104 = vector.broadcast %cst_44 : f32 to vector<3x256xf32>
    %105 = arith.maximumf %103, %104 : vector<3x256xf32>
    %c0_45 = arith.constant 0 : index
    %c0_46 = arith.constant 0 : index
    %106 = vector.load %arg7[%c0_45, %c0_46] : memref<3x256xf32, #tpu.memory_space<vmem>>, vector<3x256xf32>
    tpu.vector_store %arg7[%c0_45, %c0_46], %105 {strides = array<i32>} : memref<3x256xf32, #tpu.memory_space<vmem>>, vector<3x256xf32>,
    return
  }
  func.func @transform_0(%arg0: i32) -> (i32, i32) {
    %c0_i32 = arith.constant 0 : i32
    %c0_i32_0 = arith.constant 0 : i32
    return %c0_i32, %arg0 : i32, i32
  }
  func.func @transform_1(%arg0: i32) -> (i32, i32) {
    %c0_i32 = arith.constant 0 : i32
    %c0_i32_0 = arith.constant 0 : i32
    %c0_i32_1 = arith.constant 0 : i32
    return %c0_i32, %c0_i32_0 : i32, i32
  }
  func.func @transform_2(%arg0: i32) -> (i32, i32) {
    %c0_i32 = arith.constant 0 : i32
    %c0_i32_0 = arith.constant 0 : i32
    %c0_i32_1 = arith.constant 0 : i32
    return %c0_i32, %c0_i32_0 : i32, i32
  }
  func.func @transform_3(%arg0: i32) -> (i32, i32) {
    %c0_i32 = arith.constant 0 : i32
    %c0_i32_0 = arith.constant 0 : i32
    %c0_i32_1 = arith.constant 0 : i32
    return %c0_i32, %c0_i32_0 : i32, i32
  }
  func.func @transform_4(%arg0: i32) -> (i32, i32) {
    %c0_i32 = arith.constant 0 : i32
    %c0_i32_0 = arith.constant 0 : i32
    %c0_i32_1 = arith.constant 0 : i32
    return %c0_i32, %c0_i32_0 : i32, i32
  }
  func.func @transform_5(%arg0: i32) -> (i32, i32) {
    %c0_i32 = arith.constant 0 : i32
    %c0_i32_0 = arith.constant 0 : i32
    %c0_i32_1 = arith.constant 0 : i32
    return %c0_i32, %c0_i32_0 : i32, i32
  }
  func.func @transform_6(%arg0: i32) -> (i32, i32) {
    %c0_i32 = arith.constant 0 : i32
    %c0_i32_0 = arith.constant 0 : i32
    return %c0_i32, %arg0 : i32, i32
  }
}

</mosaic_0001>

<bundles_post_ra>
// kernel: tpu_custom_call.1
= control target key start
LH: loop header
LB: loop body
LE: loop exit
PB: predicated region body
PF: predicated region fallthrough
CT: control target
= control target key end

     0   :  { %11 = vsyncpa [#allocation3], 0  ;;  %s4118_s0 = inlined_call_operand.hbm [shape: f32[4,512], index: 0, kind: input, shape index: {}]   ;;  %s4119_s1 = inlined_call_operand.vmem [shape: bf16[256,4], index: 1, kind: input, shape index: {}]   ;;  %s4120_s2 = inlined_call_operand.vmem [shape: bf16[128,256], index: 2, kind: input, shape index: {}]   ;;  %s4121_s3 = inlined_call_operand.hbm [shape: bf16[64,128], index: 3, kind: input, shape index: {}]   ;;  %s4122_s4 = inlined_call_operand.vmem [shape: bf16[32,64], index: 4, kind: input, shape index: {}]   ;;  %s4123_s5 = inlined_call_operand.vmem [shape: bf16[3,32], index: 5, kind: input, shape index: {}]   ;;  %s4124_s6 = inlined_call_operand.hbm [shape: f32[3,512], index: 6, kind: output, shape index: {}]  }
   0x1   :  { %13 = vsyncpa [#allocation3 + $0x1], 0 }
   0x2   :  { %14 = vsyncpa [#allocation6], 0 }
   0x3   :  { %15 = vsyncpa [#allocation4], 0 }
   0x4   :  { %17 = vsyncpa [#allocation4 + $0x1], 0  ;;  %s2826_s21 = smov 0   ;;  %s2828_s22 = smov 0  }
   0x5   :  { %s2830_s23 = smov 0   ;;  %s2832_s24 = smov 0  }
   0x6 LB: > { %s2847_s25 = sadd.s32 4294967295, %s2783_s24   ;;  %s2350_s26 = sadd.s32 4294967294, %s2783_s24   ;;  %s2783_s24 = sphi %s2832_s24, %s4243_s24   ;;  %s2779_s23 = sphi %s2830_s23, %s4242_s23   ;;  %s2775_s22 = sphi %s2828_s22, %s4241_s22   ;;  %s2771_s21 = sphi %s2826_s21, %s4240_s21  }
   0x7   : > { %p43_p0 = scmp.ne.s32.totalorder %s2775_s22, %s2771_s21  ;;  %p4125_p1 = scmp.eq.s32.totalorder %s2847_s25, 0 }
   0x8   : > { %p178_p3 = scmp.eq.s32.totalorder %s2350_s26, 1  ;;  %p2351_p5 = scmp.ge.s32.totalorder %s2783_s24, 1 }
   0x9   : > { %p2856_p4 = por %p4125_p1, %p43_p0  ;;  %p185_p7 = scmp.lt.s32.totalorder %s2783_s24, 3 }
   0xa   : > { %p2861_p6 = por %p178_p3, %p43_p0  ;;  %s2785_s30 = smov [#allocation5]  }
   0xb   : > { %s4162_s27 = scalar_select %p2856_p4, 1, 0 }
   0xc   : > { %s4163_s28 = scalar_select %p2861_p6, 1, 0 }
   0xd   : > { %p2866_p8 = pnand %p2351_p5, %p185_p7  ;;  %s203_s7 = sshll.u32 %s2785_s30, 4  ;;  %s2870_s7 = int_to_ptr.vmem [resolvable:$true] %s203_s7 }
   0xe   : > { %s2882_s9 = sadd.s32 1, %s2783_s24   ;;  %s30_s10 = sadd.s32 1, %s2779_s23 }
   0xf   : > { %s4164_s29 = scalar_select %p2866_p8, 1, 0 }
  0x10   : > { %p2434_p9 = pneg %p2866_p8  ;;  %s27_s11 = ssub.s32 %s2783_s24, %s2882_s9 }
  0x11   : > { %s2655_s14 = scalar_lea.hbm %s4121_s3, 512 }
  0x12   : > { %p2877_p11 = pnand %p2434_p9, %p4125_p1  ;;  %p2656_p12 = scmp.ne.s32.totalorder %s4121_s3, %s2655_s14 }
  0x13   : > { %p2662_p5 = scmp.lt.u32.totalorder %s2655_s14, %s4121_s3 }
  0x14   : > { %p2657_p13 = pneg %p2877_p11 }
  0x16   : > { %p2658_p0 = pnand %p2657_p13, %p2656_p12 }
  0x18   : > { %p2659_p3 = pneg %p2658_p0 }
  0x1a   : > { %p2664_p7 = pnand %p2662_p5, %p2659_p3 }
  0x1c   : > { %2667 = shalt.err (!%p2664_p7)
}
  0x1d   : > { %s2668_s19 = scalar_lea.vmem %s2870_s7, 512  ;;  %p2676_p2 = scmp.lt.s32.totalorder %s2870_s7, %s2870_s7 }
  0x1e   : > { %p2669_p9 = scmp.ne.s32.totalorder %s2870_s7, %s2668_s19  ;;  %p2677_p6 = scmp.lt.s32.totalorder %s2668_s19, %s2668_s19 }
  0x20   : > { %p2671_p10 = pnand %p2669_p9, %p2657_p13  ;;  %p2678_p4 = por %p2677_p6, %p2676_p2 }
  0x22   : > { %p2672_p1 = pneg %p2671_p10 }
  0x24   : > { %p2679_p8 = pnand %p2678_p4, %p2672_p1 }
  0x26   : > { %2682 = shalt.err (!%p2679_p8)
}
  0x27   : > { %s2786_s20 = smov 64   ;;  %s2787_s26 = smov 4  }
  0x28   : > { %2437 = dma.hbm_to_vmem [thread:$0]  (!%p2877_p11), %s4121_s3, 512, %s2870_s7, [#allocation6], %s2786_s20, %s2786_s20, %s2787_s26  }
  0x29   : > { %p28_p2 = scmp.eq.s32.totalorder %s27_s11, 0  ;;  %p37_p1 = scmp.ne.s32.totalorder %s2779_s23, %s2775_s22 }
  0x2a   : > { %p38_p4 = scmp.eq.s32.totalorder %s2783_s24, 0  ;;  %p2447_p6 = scmp.lt.s32.totalorder %s2783_s24, 2 }
  0x2b   : > { %s2913_s13 = scalar_select %p28_p2, %s2779_s23, %s30_s10  }
  0x2c   : > { %p39_p8 = por %p38_p4, %p37_p1  ;;  %p4166_p10 = scmp.eq.s32.totalorder %s2847_s25, 1 }
  0x2d   : > { %s223_s15 = sand.u32 1, %s2779_s23   ;;  %s2424_s16 = sshll.u32 %s2783_s24, 7 }
  0x2e   : > { %p2917_p12 = por %p4166_p10, %p37_p1  ;;  %s2354_s17 = sshll.u32 %s223_s15, 3 }
  0x2f   : > { %s2926_s19 = scalar_lea.hbm %s4118_s0, %s2424_s16  ;;  %s227_s7 = scalar_lea.vmem [#allocation2], %s2354_s17 }
  0x30   : > { %s235_s10 = sshll.u32 %s227_s7, 4  ;;  %p2928_p11 = pnand %p2447_p6, %p39_p8  ;;  %s2932_s10 = int_to_ptr.vmem [resolvable:$true] %s235_s10 }
  0x31   : > { %s224_s20 = scalar_lea.sflag [#allocation3], %s223_s15  ;;  %s2683_s26 = scalar_lea.hbm %s2926_s19, 128 }
  0x32   : > { %p2684_p13 = scmp.ne.s32.totalorder %s2926_s19, %s2683_s26  ;;  %p2685_p0 = pneg %p2928_p11 }
  0x33   : > { %s2688_s16 = scalar_lea.hbm %s4118_s0, 256  ;;  %p2689_p7 = scmp.lt.u32.totalorder %s2926_s19, %s4118_s0 }
  0x34   : > { %p2686_p3 = pnand %p2685_p0, %p2684_p13  ;;  %p2690_p9 = scmp.lt.u32.totalorder %s2688_s16, %s2683_s26 }
  0x35   : > { %p2692_p1 = scmp.lt.u32.totalorder %s2683_s26, %s2926_s19 }
  0x36   : > { %p2687_p5 = pneg %p2686_p3  ;;  %p2691_p2 = por %p2690_p9, %p2689_p7 }
  0x38   : > { %p2693_p4 = por %p2692_p1, %p2691_p2 }
  0x3a   : > { %p2694_p6 = pnand %p2693_p4, %p2687_p5 }
  0x3c   : > { %2697 = shalt.err (!%p2694_p6)
}
  0x3d   : > { %s2698_s15 = scalar_lea.vmem %s2932_s10, 128  ;;  %s2788_s18 = smov [#allocation2]  }
  0x3e   : > { %p2699_p8 = scmp.ne.s32.totalorder %s2932_s10, %s2698_s15  ;;  %s2703_s7 = sshll.u32 %s2788_s18, 4  ;;  %s2704_s7 = int_to_ptr.vmem [resolvable:$false] %s2703_s7 }
  0x3f   : > { %s2705_s30 = scalar_lea.vmem %s2704_s7, 256  ;;  %p2706_p3 = scmp.lt.s32.totalorder %s2932_s10, %s2704_s7 }
  0x40   : > { %p2701_p10 = pnand %p2699_p8, %p2685_p0  ;;  %p2707_p7 = scmp.lt.s32.totalorder %s2705_s30, %s2698_s15 }
  0x42   : > { %p2702_p13 = pneg %p2701_p10  ;;  %p2708_p9 = por %p2707_p7, %p2706_p3 }
  0x44   : > { %p2709_p2 = pnand %p2708_p9, %p2702_p13 }
  0x46   : > { %2712 = shalt.err (!%p2709_p2)
}
  0x47   : > { %2441 = dma.hbm_to_vmem [thread:$0]  (!%p2928_p11), %s2926_s19, 128, %s2932_s10, %s224_s20  }
  0x48   : > { %p4169_p5 = scmp.ne.s32.totalorder %s4164_s29, 0 }
  0x4a   : > { %244 = sbr.rel (%p4169_p5) target bundleno = 2985 (0xba9), region = 44 }
  0x51   : > { %s2962_s26 = sand.u32 1, %s2775_s22   ;;  %p4170_p0 = scmp.ne.s32.totalorder %s4162_s27, 0 }
  0x52   : > { %s2358_s12 = sshll.u32 %s2962_s26, 3  ;;  %s247_s16 = scalar_lea.sflag [#allocation3], %s2962_s26 }
  0x53   : > { %s250_s17 = scalar_lea.vmem [#allocation2], %s2358_s12 }
  0x54   : > { %2758 = dma.done.wait (%p4170_p0), %s247_s16, 128  }
  0x55   : > { %2760 = vsyncadd (%p4170_p0), %s247_s16, 4294967168  ;;  %p4171_p11 = scmp.eq.s32.totalorder %s2847_s25, 0 }
  0x57   : > { %2762 = dma.done.wait (%p4171_p11), [#allocation6], 512   ;;  %p4172_p1 = pmov %p4171_p11 }
  0x58   : > { %v4128_v0 = vmov 0   ;;  %v286_v1 = vld [vmem:[%s250_s17] sm:$0xff]  ;;  %vm453_vm0 = vcmask 1041408   ;;  %vm404_vm1 = vcmask 31744   ;;  %v2489_v8 = vld [vmem:[%s4119_s1 + $0x10] sm:$0xff]   ;;  %v2490_v9 = vld [vmem:[%s4119_s1 + $0x18] sm:$0xff]  }
  0x59   : > { %2764 = vsyncadd (%p4172_p1), [#allocation6], 4294966784  ;;  %492 = vmatprep.mubr.bf16.mxu0 %v4128_v0  ;;  %v320_v2 = vcombine.high %v286_v1, %v286_v1  ;;  %v322_v3 = vpack.c.bf16 %v286_v1, %v286_v1  ;;  %v2487_v6 = vld [vmem:[%s4119_s1] sm:$0xff]   ;;  %v2488_v7 = vld [vmem:[%s4119_s1 + $0x8] sm:$0xff]   ;;  %vm2045_vm2 = vcmask 523264   ;;  %vm2182_vm3 = vcmask 261120  }
  0x5a   : > { %v2491_v10 = vld [vmem:[%s4119_s1 + $0x20] sm:$0xff]   ;;  %v2492_v11 = vld [vmem:[%s4119_s1 + $0x28] sm:$0xff]   ;;  %v2493_v12 = vld [vmem:[%s4119_s1 + $0x30] sm:$0xff]   ;;  %vm2227_vm4 = vcmask 1042432   ;;  %s2425_s20 = sshll.u32 %s2847_s25, 7  ;;  %s282_s8 = scalar_lea.vmem [#allocation7], %s2358_s12 }
  0x5b   : > { %v323_v4 = vpack.c.bf16 %v320_v2, %v320_v2  ;;  %v455_v5 = vsel %vm453_vm0, %v322_v3, 0  ;;  %v2494_v13 = vld [vmem:[%s4119_s1 + $0x38] sm:$0xff]   ;;  %v2495_v14 = vld [vmem:[%s4119_s1 + $0x40] sm:$0xff]   ;;  %v2496_v15 = vld [vmem:[%s4119_s1 + $0x48] sm:$0xff]   ;;  %s2270_s15 = sshll.u32 %s282_s8, 4  ;;  %s4074_s30 = scalar_lea.hbm %s4124_s6, %s2425_s20  ;;  %s4076_s15 = int_to_ptr.vmem [resolvable:$true] %s2270_s15 }
  0x5c   : > { %v2497_v16 = vld [vmem:[%s4119_s1 + $0x50] sm:$0xff]   ;;  %v2498_v17 = vld [vmem:[%s4119_s1 + $0x58] sm:$0xff]   ;;  %v2499_v18 = vld [vmem:[%s4119_s1 + $0x60] sm:$0xff]   ;;  %s2256_s16 = scalar_lea.sflag [#allocation4], %s2962_s26  ;;  %s2713_s17 = scalar_lea.vmem %s4076_s15, 128 }
  0x5d   : > { %2377 = vmatprep.subr.msk.bf16.mxu0 %vm453_vm0, %v323_v4  ;;  %v2500_v19 = vld [vmem:[%s4119_s1 + $0x68] sm:$0xff]   ;;  %v2501_v20 = vld [vmem:[%s4119_s1 + $0x70] sm:$0xff]   ;;  %v2502_v21 = vld [vmem:[%s4119_s1 + $0x78] sm:$0xff]   ;;  %p2714_p4 = scmp.ne.s32.totalorder %s4076_s15, %s2713_s17  ;;  %s2790_s25 = smov [#allocation7]  }
  0x5e   : > { %461 = vmatpush1.bf16.msra.mxu0 %v455_v5  ;;  %s2717_s12 = sshll.u32 %s2790_s25, 4  ;;  %s2718_s12 = int_to_ptr.vmem [resolvable:$false] %s2717_s12 }
  0x5f   : > { %p2715_p6 = pnand %p2714_p4, %p2917_p12  ;;  %s2719_s29 = scalar_lea.vmem %s2718_s12, 256 }
  0x60   : > { %p2720_p10 = scmp.lt.s32.totalorder %s4076_s15, %s2718_s12  ;;  %p2721_p13 = scmp.lt.s32.totalorder %s2719_s29, %s2713_s17 }
  0x61   : > { %2378 = vmatmul.mubr.msk.bf16.vlgmr.msra.gmra.mrb[0].mxu0 %vm404_vm1, %v2487_v6  ;;  %p2716_p8 = pneg %p2715_p6 }
  0x62   : > { %502 = vmatprep.mubr.bf16.mxu0 %v4128_v0  ;;  %p2722_p3 = por %p2721_p13, %p2720_p10 }
  0x64   : > { %p2723_p7 = pnand %p2722_p3, %p2716_p8 }
  0x69   : > { %2379 = vmatmul.mubr.msk.bf16.gmra.mrb[4].mxu0 %vm404_vm1, %v2488_v7 }
  0x6a   : > { %512 = vmatprep.mubr.bf16.mxu0 %v4128_v0 }
  0x71   : > { %2380 = vmatmul.mubr.msk.bf16.gmra.mrb[8].mxu0 %vm404_vm1, %v2489_v8 }
  0x72   : > { %522 = vmatprep.mubr.bf16.mxu0 %v4128_v0 }
  0x79   : > { %2381 = vmatmul.mubr.msk.bf16.gmra.mrb[12].mxu0 %vm404_vm1, %v2490_v9 }
  0x7a   : > { %532 = vmatprep.mubr.bf16.mxu0 %v4128_v0 }
  0x81   : > { %2382 = vmatmul.mubr.msk.bf16.gmra.mrb[16].mxu0 %vm404_vm1, %v2491_v10 }
  0x82   : > { %542 = vmatprep.mubr.bf16.mxu0 %v4128_v0 }
  0x89   : > { %2383 = vmatmul.mubr.msk.bf16.gmra.mrb[20].mxu0 %vm404_vm1, %v2492_v11 }
  0x8a   : > { %552 = vmatprep.mubr.bf16.mxu0 %v4128_v0 }
  0x91   : > { %2384 = vmatmul.mubr.msk.bf16.gmra.mrb[24].mxu0 %vm404_vm1, %v2493_v12 }
  0x92   : > { %562 = vmatprep.mubr.bf16.mxu0 %v4128_v0 }
  0x99   : > { %2385 = vmatmul.mubr.msk.bf16.gmra.mrb[28].mxu0 %vm404_vm1, %v2494_v13 }
  0x9a   : > { %572 = vmatprep.mubr.bf16.mxu0 %v4128_v0 }
  0xa1   : > { %2386 = vmatmul.mubr.msk.bf16.gmra.mrb[32].mxu0 %vm404_vm1, %v2495_v14 }
  0xa2   : > { %582 = vmatprep.mubr.bf16.mxu0 %v4128_v0 }
  0xa9   : > { %2387 = vmatmul.mubr.msk.bf16.gmra.mrb[36].mxu0 %vm404_vm1, %v2496_v15 }
  0xaa   : > { %592 = vmatprep.mubr.bf16.mxu0 %v4128_v0 }
  0xb1   : > { %2388 = vmatmul.mubr.msk.bf16.gmra.mrb[40].mxu0 %vm404_vm1, %v2497_v16 }
  0xb2   : > { %602 = vmatprep.mubr.bf16.mxu0 %v4128_v0 }
  0xb9   : > { %2389 = vmatmul.mubr.msk.bf16.gmra.mrb[44].mxu0 %vm404_vm1, %v2498_v17 }
  0xba   : > { %612 = vmatprep.mubr.bf16.mxu0 %v4128_v0 }
  0xc1   : > { %2390 = vmatmul.mubr.msk.bf16.gmra.mrb[48].mxu0 %vm404_vm1, %v2499_v18 }
  0xc2   : > { %622 = vmatprep.mubr.bf16.mxu0 %v4128_v0 }
  0xc9   : > { %2391 = vmatmul.mubr.msk.bf16.gmra.mrb[52].mxu0 %vm404_vm1, %v2500_v19 }
  0xca   : > { %632 = vmatprep.mubr.bf16.mxu0 %v4128_v0 }
  0xd1   : > { %2392 = vmatmul.mubr.msk.bf16.gmra.mrb[56].mxu0 %vm404_vm1, %v2501_v20 }
  0xd2   : > { %642 = vmatprep.mubr.bf16.mxu0 %v4128_v0 }
  0xd9   : > { %2393 = vmatmul.mubr.msk.bf16.gmra.mrb[60].mxu0 %vm404_vm1, %v2502_v21 }
  0xda   : > { %2084 = vmatprep.mubr.bf16.mxu0 %v4128_v0 }
 0x134   : > { %v3057_v22 = vpop.f32.mrb[0].mxu0 }
 0x135   : > { %v3059_v23 = vpop.f32.mrb[1].mxu0 }
 0x136   : > { %v3061_v24 = vpop.f32.mrb[2].mxu0  ;;  %v653_v25 = vadd.f32 %v3059_v23, %v3057_v22 }
 0x137   : > { %v3065_v26 = vpop.f32.mrb[3].mxu0 }
 0x138   : > { %654 = vadd.xlane.f32.xlu0 %v653_v25  ;;  %v656_v27 = vadd.f32 %v3065_v26, %v3061_v24 }
 0x13c   : > { %657 = vadd.xlane.f32.xlu0 %v656_v27  ;;  %v3069_v28 = vpop.f32.mrb[4].mxu0 }
 0x13d   : > { %v3071_v29 = vpop.f32.mrb[5].mxu0 }
 0x13e   : > { %v3073_v30 = vpop.f32.mrb[6].mxu0  ;;  %v659_v31 = vadd.f32 %v3071_v29, %v3069_v28 }
 0x13f   : > { %v3077_v32 = vpop.f32.mrb[7].mxu0 }
 0x140   : > { %660 = vadd.xlane.f32.xlu1 %v659_v31  ;;  %v662_v33 = vadd.f32 %v3077_v32, %v3073_v30 }
 0x144   : > { %663 = vadd.xlane.f32.xlu1 %v662_v33  ;;  %v3081_v34 = vpop.f32.mrb[8].mxu0 }
 0x145   : > { %v3083_v35 = vpop.f32.mrb[9].mxu0 }
 0x146   : > { %v3085_v36 = vpop.f32.mrb[10].mxu0  ;;  %v665_v37 = vadd.f32 %v3083_v35, %v3081_v34 }
 0x147   : > { %v3089_v38 = vpop.f32.mrb[11].mxu0 }
 0x148   : > { %666 = vadd.xlane.f32.xlu0 %v665_v37  ;;  %v668_v39 = vadd.f32 %v3089_v38, %v3085_v36 }
 0x14a   : > { %669 = vadd.xlane.f32.xlu1 %v668_v39 }
 0x14c   : > { %v3093_v40 = vpop.f32.mrb[12].mxu0 }
 0x14d   : > { %v3095_v41 = vpop.f32.mrb[13].mxu0 }
 0x14e   : > { %v3097_v42 = vpop.f32.mrb[14].mxu0  ;;  %v671_v43 = vadd.f32 %v3095_v41, %v3093_v40 }
 0x14f   : > { %v3101_v44 = vpop.f32.mrb[15].mxu0 }
 0x150   : > { %672 = vadd.xlane.f32.xlu0 %v671_v43  ;;  %v674_v45 = vadd.f32 %v3101_v44, %v3097_v42 }
 0x152   : > { %675 = vadd.xlane.f32.xlu1 %v674_v45 }
 0x154   : > { %v3105_v46 = vpop.f32.mrb[16].mxu0 }
 0x155   : > { %v3107_v47 = vpop.f32.mrb[17].mxu0 }
 0x156   : > { %v3109_v48 = vpop.f32.mrb[18].mxu0  ;;  %v677_v49 = vadd.f32 %v3107_v47, %v3105_v46 }
 0x157   : > { %v3113_v50 = vpop.f32.mrb[19].mxu0 }
 0x158   : > { %678 = vadd.xlane.f32.xlu0 %v677_v49  ;;  %v680_v51 = vadd.f32 %v3113_v50, %v3109_v48 }
 0x15a   : > { %681 = vadd.xlane.f32.xlu1 %v680_v51 }
 0x15c   : > { %v3117_v52 = vpop.f32.mrb[20].mxu0 }
 0x15d   : > { %v3119_v53 = vpop.f32.mrb[21].mxu0 }
 0x15e   : > { %v3121_v54 = vpop.f32.mrb[22].mxu0  ;;  %v683_v55 = vadd.f32 %v3119_v53, %v3117_v52 }
 0x15f   : > { %v3125_v56 = vpop.f32.mrb[23].mxu0 }
 0x160   : > { %684 = vadd.xlane.f32.xlu0 %v683_v55  ;;  %v686_v57 = vadd.f32 %v3125_v56, %v3121_v54 }
 0x162   : > { %687 = vadd.xlane.f32.xlu1 %v686_v57 }
 0x164   : > { %v3129_v58 = vpop.f32.mrb[24].mxu0 }
 0x165   : > { %v3131_v59 = vpop.f32.mrb[25].mxu0 }
 0x166   : > { %v3133_v60 = vpop.f32.mrb[26].mxu0  ;;  %v689_v61 = vadd.f32 %v3131_v59, %v3129_v58 }
 0x167   : > { %v3137_v62 = vpop.f32.mrb[27].mxu0 }
 0x168   : > { %690 = vadd.xlane.f32.xlu0 %v689_v61  ;;  %v692_v63 = vadd.f32 %v3137_v62, %v3133_v60 }
 0x16a   : > { %693 = vadd.xlane.f32.xlu1 %v692_v63 }
 0x16c   : > { %v3141_v1 = vpop.f32.mrb[28].mxu0 }
 0x16d   : > { %v3143_v2 = vpop.f32.mrb[29].mxu0 }
 0x16e   : > { %v3145_v3 = vpop.f32.mrb[30].mxu0  ;;  %v695_v4 = vadd.f32 %v3143_v2, %v3141_v1 }
 0x16f   : > { %v3149_v5 = vpop.f32.mrb[31].mxu0 }
 0x170   : > { %696 = vadd.xlane.f32.xlu0 %v695_v4  ;;  %v698_v6 = vadd.f32 %v3149_v5, %v3145_v3 }
 0x172   : > { %699 = vadd.xlane.f32.xlu1 %v698_v6 }
 0x174   : > { %v3153_v7 = vpop.f32.mrb[32].mxu0 }
 0x175   : > { %v3155_v8 = vpop.f32.mrb[33].mxu0 }
 0x176   : > { %v3157_v9 = vpop.f32.mrb[34].mxu0  ;;  %v701_v10 = vadd.f32 %v3155_v8, %v3153_v7 }
 0x177   : > { %v3161_v11 = vpop.f32.mrb[35].mxu0 }
 0x178   : > { %702 = vadd.xlane.f32.xlu0 %v701_v10  ;;  %v704_v12 = vadd.f32 %v3161_v11, %v3157_v9 }
 0x17a   : > { %705 = vadd.xlane.f32.xlu1 %v704_v12 }
 0x17c   : > { %v3165_v13 = vpop.f32.mrb[36].mxu0 }
 0x17d   : > { %v3167_v14 = vpop.f32.mrb[37].mxu0 }
 0x17e   : > { %v3169_v15 = vpop.f32.mrb[38].mxu0  ;;  %v707_v16 = vadd.f32 %v3167_v14, %v3165_v13 }
 0x17f   : > { %v3173_v17 = vpop.f32.mrb[39].mxu0 }
 0x180   : > { %708 = vadd.xlane.f32.xlu0 %v707_v16  ;;  %v710_v18 = vadd.f32 %v3173_v17, %v3169_v15 }
 0x182   : > { %711 = vadd.xlane.f32.xlu1 %v710_v18 }
 0x184   : > { %v3177_v19 = vpop.f32.mrb[40].mxu0 }
 0x185   : > { %v3179_v20 = vpop.f32.mrb[41].mxu0 }
 0x186   : > { %v3181_v21 = vpop.f32.mrb[42].mxu0  ;;  %v713_v25 = vadd.f32 %v3179_v20, %v3177_v19 }
 0x187   : > { %v3185_v27 = vpop.f32.mrb[43].mxu0 }
 0x188   : > { %714 = vadd.xlane.f32.xlu0 %v713_v25  ;;  %v716_v31 = vadd.f32 %v3185_v27, %v3181_v21 }
 0x18a   : > { %717 = vadd.xlane.f32.xlu1 %v716_v31 }
 0x18c   : > { %v3189_v33 = vpop.f32.mrb[44].mxu0 }
 0x18d   : > { %v3191_v37 = vpop.f32.mrb[45].mxu0 }
 0x18e   : > { %v3193_v39 = vpop.f32.mrb[46].mxu0  ;;  %v719_v43 = vadd.f32 %v3191_v37, %v3189_v33 }
 0x18f   : > { %v3197_v45 = vpop.f32.mrb[47].mxu0 }
 0x190   : > { %720 = vadd.xlane.f32.xlu0 %v719_v43  ;;  %v722_v49 = vadd.f32 %v3197_v45, %v3193_v39 }
 0x192   : > { %723 = vadd.xlane.f32.xlu1 %v722_v49 }
 0x194   : > { %v3201_v51 = vpop.f32.mrb[48].mxu0 }
 0x195   : > { %v3203_v55 = vpop.f32.mrb[49].mxu0 }
 0x196   : > { %v3205_v57 = vpop.f32.mrb[50].mxu0  ;;  %v725_v61 = vadd.f32 %v3203_v55, %v3201_v51 }
 0x197   : > { %v3209_v63 = vpop.f32.mrb[51].mxu0 }
 0x198   : > { %726 = vadd.xlane.f32.xlu0 %v725_v61  ;;  %v728_v4 = vadd.f32 %v3209_v63, %v3205_v57 }
 0x19a   : > { %729 = vadd.xlane.f32.xlu1 %v728_v4 }
 0x19c   : > { %v3213_v6 = vpop.f32.mrb[52].mxu0 }
 0x19d   : > { %4173 = vst [vmem:[#allocation11_spill] sm:$0xff] %v3213_v6  ;;  %v3215_v10 = vpop.f32.mrb[53].mxu0 }
 0x19e   : > { %4174 = vst [vmem:[#allocation12_spill] sm:$0xff] %v3215_v10  ;;  %v3217_v12 = vpop.f32.mrb[54].mxu0  ;;  %v731_v16 = vadd.f32 %v3215_v10, %v3213_v6 }
 0x19f   : > { %4175 = vst [vmem:[#allocation13_spill] sm:$0xff] %v3217_v12  ;;  %v3221_v18 = vpop.f32.mrb[55].mxu0 }
 0x1a0   : > { %4176 = vst [vmem:[#allocation14_spill] sm:$0xff] %v3221_v18  ;;  %732 = vadd.xlane.f32.xlu0 %v731_v16  ;;  %v734_v25 = vadd.f32 %v3221_v18, %v3217_v12 }
 0x1a2   : > { %735 = vadd.xlane.f32.xlu1 %v734_v25 }
 0x1a4   : > { %v3225_v31 = vpop.f32.mrb[56].mxu0 }
 0x1a5   : > { %4177 = vst [vmem:[#allocation15_spill] sm:$0xff] %v3225_v31  ;;  %v3227_v43 = vpop.f32.mrb[57].mxu0 }
 0x1a6   : > { %4178 = vst [vmem:[#allocation16_spill] sm:$0xff] %v3227_v43  ;;  %v3229_v49 = vpop.f32.mrb[58].mxu0  ;;  %v737_v61 = vadd.f32 %v3227_v43, %v3225_v31 }
 0x1a7   : > { %4179 = vst [vmem:[#allocation17_spill] sm:$0xff] %v3229_v49  ;;  %v3233_v4 = vpop.f32.mrb[59].mxu0 }
 0x1a8   : > { %4180 = vst [vmem:[#allocation18_spill] sm:$0xff] %v3233_v4  ;;  %738 = vadd.xlane.f32.xlu0 %v737_v61  ;;  %v740_v0 = vadd.f32 %v3233_v4, %v3229_v49 }
 0x1aa   : > { %741 = vadd.xlane.f32.xlu1 %v740_v0 }
 0x1ac   : > { %v3237_v16 = vpop.f32.mrb[60].mxu0 }
 0x1ad   : > { %4181 = vst [vmem:[#allocation19_spill] sm:$0xff] %v3237_v16  ;;  %v3239_v18 = vpop.f32.mrb[61].mxu0 }
 0x1ae   : > { %4182 = vst [vmem:[#allocation20_spill] sm:$0xff] %v3239_v18  ;;  %v3241_v25 = vpop.f32.mrb[62].mxu0  ;;  %v743_v12 = vadd.f32 %v3239_v18, %v3237_v16 }
 0x1af   : > { %v3245_v10 = vpop.f32.mrb[63].mxu0 }
 0x1b0   : > { %4183 = vst [vmem:[#allocation21_spill] sm:$0xff] %v3245_v10  ;;  %744 = vadd.xlane.f32.xlu0 %v743_v12  ;;  %v746_v43 = vadd.f32 %v3245_v10, %v3241_v25 }
 0x1b2   : > { %747 = vadd.xlane.f32.xlu1 %v746_v43 }
 0x1c5   : > { %v655_v61 = vpop.xlane.xlu0 %654 }
 0x1c6   : > { %v749_v31 = vmul.f32 0.00390625, %v655_v61 }
 0x1c8   : > { %v3250_v0 = vsub.f32 %v3057_v22, %v749_v31  ;;  %v3253_v4 = vsub.f32 %v3059_v23, %v749_v31 }
 0x1c9   : > { %v658_v49 = vpop.xlane.xlu0 %657 }
 0x1ca   : > { %4184 = vst [vmem:[#allocation22_spill] sm:$0xff] %v3250_v0  ;;  %4185 = vst [vmem:[#allocation23_spill] sm:$0xff] %v3253_v4  ;;  %v750_v6 = vmul.f32 0.00390625, %v658_v49  ;;  %v845_v18 = vmul.f32 %v3250_v0, %v3250_v0  ;;  %v846_v12 = vmul.f32 %v3253_v4, %v3253_v4 }
 0x1cc   : > { %v3260_v16 = vsub.f32 %v3061_v24, %v750_v6  ;;  %v3263_v43 = vsub.f32 %v3065_v26, %v750_v6  ;;  %v909_v61 = vadd.f32 %v846_v12, %v845_v18 }
 0x1cd   : > { %v661_v22 = vpop.xlane.xlu1 %660 }
 0x1ce   : > { %v751_v10 = vmul.f32 0.00390625, %v661_v22  ;;  %910 = vadd.xlane.f32.xlu0 %v909_v61  ;;  %v847_v23 = vmul.f32 %v3260_v16, %v3260_v16  ;;  %v848_v31 = vmul.f32 %v3263_v43, %v3263_v43 }
 0x1d0   : > { %v3270_v49 = vsub.f32 %v3069_v28, %v751_v10  ;;  %v3273_v0 = vsub.f32 %v3071_v29, %v751_v10  ;;  %v912_v24 = vadd.f32 %v848_v31, %v847_v23 }
 0x1d1   : > { %v664_v4 = vpop.xlane.xlu1 %663 }
 0x1d2   : > { %v752_v26 = vmul.f32 0.00390625, %v664_v4  ;;  %913 = vadd.xlane.f32.xlu1 %v912_v24  ;;  %v849_v6 = vmul.f32 %v3270_v49, %v3270_v49  ;;  %v850_v18 = vmul.f32 %v3273_v0, %v3273_v0 }
 0x1d4   : > { %v3280_v12 = vsub.f32 %v3073_v30, %v752_v26  ;;  %v3283_v61 = vsub.f32 %v3077_v32, %v752_v26  ;;  %v915_v28 = vadd.f32 %v850_v18, %v849_v6 }
 0x1d5   : > { %v667_v22 = vpop.xlane.xlu0 %666 }
 0x1d6   : > { %v753_v29 = vmul.f32 0.00390625, %v667_v22  ;;  %916 = vadd.xlane.f32.xlu0 %v915_v28  ;;  %v851_v10 = vmul.f32 %v3280_v12, %v3280_v12  ;;  %v852_v4 = vmul.f32 %v3283_v61, %v3283_v61 }
 0x1d7   : > { %v670_v23 = vpop.xlane.xlu1 %669 }
 0x1d8   : > { %v3290_v31 = vsub.f32 %v3081_v34, %v753_v29  ;;  %v3293_v30 = vsub.f32 %v3083_v35, %v753_v29  ;;  %v754_v24 = vmul.f32 0.00390625, %v670_v23  ;;  %v918_v32 = vadd.f32 %v852_v4, %v851_v10 }
 0x1da   : > { %v3296_v26 = vsub.f32 %v3085_v36, %v754_v24  ;;  %v3299_v6 = vsub.f32 %v3089_v38, %v754_v24  ;;  %919 = vadd.xlane.f32.xlu1 %v918_v32  ;;  %v853_v18 = vmul.f32 %v3290_v31, %v3290_v31  ;;  %v854_v28 = vmul.f32 %v3293_v30, %v3293_v30 }
 0x1dc   : > { %v921_v34 = vadd.f32 %v854_v28, %v853_v18  ;;  %v855_v35 = vmul.f32 %v3296_v26, %v3296_v26  ;;  %v856_v22 = vmul.f32 %v3299_v6, %v3299_v6 }
 0x1dd   : > { %v673_v29 = vpop.xlane.xlu0 %672 }
 0x1de   : > { %v755_v36 = vmul.f32 0.00390625, %v673_v29  ;;  %922 = vadd.xlane.f32.xlu0 %v921_v34  ;;  %v924_v10 = vadd.f32 %v856_v22, %v855_v35 }
 0x1df   : > { %v676_v38 = vpop.xlane.xlu1 %675 }
 0x1e0   : > { %v3310_v4 = vsub.f32 %v3093_v40, %v755_v36  ;;  %v3313_v23 = vsub.f32 %v3095_v41, %v755_v36  ;;  %v756_v24 = vmul.f32 0.00390625, %v676_v38  ;;  %925 = vadd.xlane.f32.xlu1 %v924_v10 }
 0x1e2   : > { %v3316_v32 = vsub.f32 %v3097_v42, %v756_v24  ;;  %v3319_v18 = vsub.f32 %v3101_v44, %v756_v24  ;;  %v857_v28 = vmul.f32 %v3310_v4, %v3310_v4  ;;  %v858_v34 = vmul.f32 %v3313_v23, %v3313_v23 }
 0x1e4   : > { %v927_v35 = vadd.f32 %v858_v34, %v857_v28  ;;  %v859_v40 = vmul.f32 %v3316_v32, %v3316_v32  ;;  %v860_v41 = vmul.f32 %v3319_v18, %v3319_v18 }
 0x1e5   : > { %v679_v22 = vpop.xlane.xlu0 %678 }
 0x1e6   : > { %v757_v29 = vmul.f32 0.00390625, %v679_v22  ;;  %928 = vadd.xlane.f32.xlu0 %v927_v35  ;;  %v930_v42 = vadd.f32 %v860_v41, %v859_v40 }
 0x1e7   : > { %v682_v36 = vpop.xlane.xlu1 %681 }
 0x1e8   : > { %v3330_v44 = vsub.f32 %v3105_v46, %v757_v29  ;;  %v3333_v10 = vsub.f32 %v3107_v47, %v757_v29  ;;  %v758_v38 = vmul.f32 0.00390625, %v682_v36  ;;  %931 = vadd.xlane.f32.xlu1 %v930_v42 }
 0x1ea   : > { %v3336_v24 = vsub.f32 %v3109_v48, %v758_v38  ;;  %v3339_v28 = vsub.f32 %v3113_v50, %v758_v38  ;;  %v861_v34 = vmul.f32 %v3330_v44, %v3330_v44  ;;  %v862_v35 = vmul.f32 %v3333_v10, %v3333_v10 }
 0x1ec   : > { %v933_v40 = vadd.f32 %v862_v35, %v861_v34  ;;  %v863_v46 = vmul.f32 %v3336_v24, %v3336_v24  ;;  %v864_v47 = vmul.f32 %v3339_v28, %v3339_v28 }
 0x1ed   : > { %v685_v41 = vpop.xlane.xlu0 %684 }
 0x1ee   : > { %v759_v22 = vmul.f32 0.00390625, %v685_v41  ;;  %934 = vadd.xlane.f32.xlu0 %v933_v40  ;;  %v936_v48 = vadd.f32 %v864_v47, %v863_v46 }
 0x1ef   : > { %v688_v29 = vpop.xlane.xlu1 %687 }
 0x1f0   : > { %v3350_v50 = vsub.f32 %v3117_v52, %v759_v22  ;;  %v3353_v42 = vsub.f32 %v3119_v53, %v759_v22  ;;  %v760_v36 = vmul.f32 0.00390625, %v688_v29  ;;  %937 = vadd.xlane.f32.xlu1 %v936_v48 }
 0x1f2   : > { %v3356_v38 = vsub.f32 %v3121_v54, %v760_v36  ;;  %v3359_v34 = vsub.f32 %v3125_v56, %v760_v36  ;;  %v865_v35 = vmul.f32 %v3350_v50, %v3350_v50  ;;  %v866_v40 = vmul.f32 %v3353_v42, %v3353_v42 }
 0x1f4   : > { %v939_v46 = vadd.f32 %v866_v40, %v865_v35  ;;  %v867_v52 = vmul.f32 %v3356_v38, %v3356_v38  ;;  %v868_v53 = vmul.f32 %v3359_v34, %v3359_v34 }
 0x1f5   : > { %v691_v47 = vpop.xlane.xlu0 %690 }
 0x1f6   : > { %v761_v41 = vmul.f32 0.00390625, %v691_v47  ;;  %940 = vadd.xlane.f32.xlu0 %v939_v46  ;;  %v942_v54 = vadd.f32 %v868_v53, %v867_v52 }
 0x1f7   : > { %v694_v22 = vpop.xlane.xlu1 %693 }
 0x1f8   : > { %v3370_v56 = vsub.f32 %v3129_v58, %v761_v41  ;;  %v3373_v48 = vsub.f32 %v3131_v59, %v761_v41  ;;  %v762_v29 = vmul.f32 0.00390625, %v694_v22  ;;  %943 = vadd.xlane.f32.xlu1 %v942_v54 }
 0x1fa   : > { %v3376_v36 = vsub.f32 %v3133_v60, %v762_v29  ;;  %v3379_v35 = vsub.f32 %v3137_v62, %v762_v29  ;;  %v869_v40 = vmul.f32 %v3370_v56, %v3370_v56  ;;  %v870_v46 = vmul.f32 %v3373_v48, %v3373_v48 }
 0x1fc   : > { %v945_v52 = vadd.f32 %v870_v46, %v869_v40  ;;  %v871_v58 = vmul.f32 %v3376_v36, %v3376_v36  ;;  %v872_v59 = vmul.f32 %v3379_v35, %v3379_v35 }
 0x1fd   : > { %v697_v53 = vpop.xlane.xlu0 %696 }
 0x1fe   : > { %v763_v47 = vmul.f32 0.00390625, %v697_v53  ;;  %946 = vadd.xlane.f32.xlu0 %v945_v52  ;;  %v948_v60 = vadd.f32 %v872_v59, %v871_v58 }
 0x1ff   : > { %v700_v41 = vpop.xlane.xlu1 %699 }
 0x200   : > { %v3390_v62 = vsub.f32 %v3141_v1, %v763_v47  ;;  %v3393_v54 = vsub.f32 %v3143_v2, %v763_v47  ;;  %v764_v22 = vmul.f32 0.00390625, %v700_v41  ;;  %949 = vadd.xlane.f32.xlu1 %v948_v60 }
 0x202   : > { %v3396_v29 = vsub.f32 %v3145_v3, %v764_v22  ;;  %v3399_v40 = vsub.f32 %v3149_v5, %v764_v22  ;;  %v873_v46 = vmul.f32 %v3390_v62, %v3390_v62  ;;  %v874_v52 = vmul.f32 %v3393_v54, %v3393_v54 }
 0x204   : > { %v951_v58 = vadd.f32 %v874_v52, %v873_v46  ;;  %v875_v1 = vmul.f32 %v3396_v29, %v3396_v29  ;;  %v876_v2 = vmul.f32 %v3399_v40, %v3399_v40 }
 0x205   : > { %v703_v59 = vpop.xlane.xlu0 %702 }
 0x206   : > { %v765_v53 = vmul.f32 0.00390625, %v703_v59  ;;  %952 = vadd.xlane.f32.xlu0 %v951_v58  ;;  %v954_v3 = vadd.f32 %v876_v2, %v875_v1 }
 0x207   : > { %v706_v47 = vpop.xlane.xlu1 %705 }
 0x208   : > { %v3410_v5 = vsub.f32 %v3153_v7, %v765_v53  ;;  %v3413_v60 = vsub.f32 %v3155_v8, %v765_v53  ;;  %v766_v41 = vmul.f32 0.00390625, %v706_v47  ;;  %955 = vadd.xlane.f32.xlu1 %v954_v3 }
 0x20a   : > { %v3416_v22 = vsub.f32 %v3157_v9, %v766_v41  ;;  %v3419_v46 = vsub.f32 %v3161_v11, %v766_v41  ;;  %v877_v52 = vmul.f32 %v3410_v5, %v3410_v5  ;;  %v878_v58 = vmul.f32 %v3413_v60, %v3413_v60 }
 0x20c   : > { %v957_v1 = vadd.f32 %v878_v58, %v877_v52  ;;  %v879_v7 = vmul.f32 %v3416_v22, %v3416_v22  ;;  %v880_v8 = vmul.f32 %v3419_v46, %v3419_v46 }
 0x20d   : > { %v709_v2 = vpop.xlane.xlu0 %708 }
 0x20e   : > { %v767_v59 = vmul.f32 0.00390625, %v709_v2  ;;  %958 = vadd.xlane.f32.xlu0 %v957_v1  ;;  %v960_v9 = vadd.f32 %v880_v8, %v879_v7 }
 0x20f   : > { %v712_v53 = vpop.xlane.xlu1 %711 }
 0x210   : > { %v3430_v11 = vsub.f32 %v3165_v13, %v767_v59  ;;  %v3433_v3 = vsub.f32 %v3167_v14, %v767_v59  ;;  %v768_v47 = vmul.f32 0.00390625, %v712_v53  ;;  %961 = vadd.xlane.f32.xlu1 %v960_v9 }
 0x212   : > { %v3436_v41 = vsub.f32 %v3169_v15, %v768_v47  ;;  %v3439_v52 = vsub.f32 %v3173_v17, %v768_v47  ;;  %v881_v58 = vmul.f32 %v3430_v11, %v3430_v11  ;;  %v882_v1 = vmul.f32 %v3433_v3, %v3433_v3 }
 0x214   : > { %v963_v7 = vadd.f32 %v882_v1, %v881_v58  ;;  %v883_v13 = vmul.f32 %v3436_v41, %v3436_v41  ;;  %v884_v14 = vmul.f32 %v3439_v52, %v3439_v52 }
 0x215   : > { %v715_v8 = vpop.xlane.xlu0 %714 }
 0x216   : > { %v769_v2 = vmul.f32 0.00390625, %v715_v8  ;;  %964 = vadd.xlane.f32.xlu0 %v963_v7  ;;  %v966_v15 = vadd.f32 %v884_v14, %v883_v13 }
 0x217   : > { %v718_v59 = vpop.xlane.xlu1 %717 }
 0x218   : > { %v3450_v17 = vsub.f32 %v3177_v19, %v769_v2  ;;  %v3453_v9 = vsub.f32 %v3179_v20, %v769_v2  ;;  %v770_v53 = vmul.f32 0.00390625, %v718_v59  ;;  %967 = vadd.xlane.f32.xlu1 %v966_v15 }
 0x21a   : > { %v3456_v47 = vsub.f32 %v3181_v21, %v770_v53  ;;  %v3459_v58 = vsub.f32 %v3185_v27, %v770_v53  ;;  %v885_v1 = vmul.f32 %v3450_v17, %v3450_v17  ;;  %v886_v7 = vmul.f32 %v3453_v9, %v3453_v9 }
 0x21c   : > { %v969_v13 = vadd.f32 %v886_v7, %v885_v1  ;;  %v887_v19 = vmul.f32 %v3456_v47, %v3456_v47  ;;  %v888_v20 = vmul.f32 %v3459_v58, %v3459_v58 }
 0x21d   : > { %v721_v14 = vpop.xlane.xlu0 %720 }
 0x21e   : > { %v771_v8 = vmul.f32 0.00390625, %v721_v14  ;;  %970 = vadd.xlane.f32.xlu0 %v969_v13  ;;  %v972_v21 = vadd.f32 %v888_v20, %v887_v19 }
 0x21f   : > { %v724_v2 = vpop.xlane.xlu1 %723 }
 0x220   : > { %v3470_v27 = vsub.f32 %v3189_v33, %v771_v8  ;;  %v3473_v15 = vsub.f32 %v3191_v37, %v771_v8  ;;  %v772_v59 = vmul.f32 0.00390625, %v724_v2  ;;  %973 = vadd.xlane.f32.xlu1 %v972_v21 }
 0x222   : > { %4186 = vst [vmem:[#allocation24_spill] sm:$0xff] %v3470_v27  ;;  %v3476_v53 = vsub.f32 %v3193_v39, %v772_v59  ;;  %v3479_v1 = vsub.f32 %v3197_v45, %v772_v59  ;;  %v889_v7 = vmul.f32 %v3470_v27, %v3470_v27  ;;  %v890_v13 = vmul.f32 %v3473_v15, %v3473_v15 }
 0x224   : > { %4187 = vst [vmem:[#allocation25_spill] sm:$0xff] %v3476_v53  ;;  %4188 = vst [vmem:[#allocation26_spill] sm:$0xff] %v3479_v1  ;;  %v975_v19 = vadd.f32 %v890_v13, %v889_v7  ;;  %v891_v33 = vmul.f32 %v3476_v53, %v3476_v53  ;;  %v892_v37 = vmul.f32 %v3479_v1, %v3479_v1 }
 0x225   : > { %v727_v20 = vpop.xlane.xlu0 %726 }
 0x226   : > { %v773_v14 = vmul.f32 0.00390625, %v727_v20  ;;  %976 = vadd.xlane.f32.xlu0 %v975_v19  ;;  %v978_v39 = vadd.f32 %v892_v37, %v891_v33 }
 0x227   : > { %v730_v8 = vpop.xlane.xlu1 %729 }
 0x228   : > { %v3490_v45 = vsub.f32 %v3201_v51, %v773_v14  ;;  %v3493_v21 = vsub.f32 %v3203_v55, %v773_v14  ;;  %v774_v2 = vmul.f32 0.00390625, %v730_v8  ;;  %979 = vadd.xlane.f32.xlu1 %v978_v39  ;;  %v4195_v8 = vld [vmem:[#allocation12_spill] sm:$0xff] }
 0x22a   : > { %4189 = vst [vmem:[#allocation27_spill] sm:$0xff] %v3490_v45  ;;  %4190 = vst [vmem:[#allocation28_spill] sm:$0xff] %v3493_v21  ;;  %v3496_v59 = vsub.f32 %v3205_v57, %v774_v2  ;;  %v3499_v7 = vsub.f32 %v3209_v63, %v774_v2  ;;  %v893_v13 = vmul.f32 %v3490_v45, %v3490_v45  ;;  %v4193_v63 = vld [vmem:[#allocation11_spill] sm:$0xff] }
 0x22b   : > { %v894_v19 = vmul.f32 %v3493_v21, %v3493_v21 }
 0x22c   : > { %4191 = vst [vmem:[#allocation29_spill] sm:$0xff] %v3496_v59  ;;  %4192 = vst [vmem:[#allocation30_spill] sm:$0xff] %v3499_v7  ;;  %v895_v51 = vmul.f32 %v3496_v59, %v3496_v59  ;;  %v896_v55 = vmul.f32 %v3499_v7, %v3499_v7  ;;  %v4199_v59 = vld [vmem:[#allocation14_spill] sm:$0xff] }
 0x22d   : > { %v981_v33 = vadd.f32 %v894_v19, %v893_v13  ;;  %v733_v37 = vpop.xlane.xlu0 %732  ;;  %v4197_v13 = vld [vmem:[#allocation13_spill] sm:$0xff] }
 0x22e   : > { %v775_v20 = vmul.f32 0.00390625, %v733_v37  ;;  %v984_v57 = vadd.f32 %v896_v55, %v895_v51 }
 0x22f   : > { %982 = vadd.xlane.f32.xlu0 %v981_v33  ;;  %v736_v14 = vpop.xlane.xlu1 %735 }
 0x230   : > { %v3510_v39 = vsub.f32 %v4193_v63, %v775_v20  ;;  %v3513_v2 = vsub.f32 %v4195_v8, %v775_v20  ;;  %v776_v45 = vmul.f32 0.00390625, %v736_v14  ;;  %985 = vadd.xlane.f32.xlu1 %v984_v57 }
 0x232   : > { %4194 = vst [vmem:[#allocation11_spill] sm:$0xff] %v3510_v39  ;;  %4196 = vst [vmem:[#allocation12_spill] sm:$0xff] %v3513_v2  ;;  %v3516_v19 = vsub.f32 %v4197_v13, %v776_v45  ;;  %v3519_v21 = vsub.f32 %v4199_v59, %v776_v45  ;;  %v897_v37 = vmul.f32 %v3510_v39, %v3510_v39  ;;  %v4201_v45 = vld [vmem:[#allocation15_spill] sm:$0xff]  ;;  %v4203_v13 = vld [vmem:[#allocation16_spill] sm:$0xff] }
 0x233   : > { %v898_v33 = vmul.f32 %v3513_v2, %v3513_v2 }
 0x234   : > { %4198 = vst [vmem:[#allocation13_spill] sm:$0xff] %v3516_v19  ;;  %4200 = vst [vmem:[#allocation14_spill] sm:$0xff] %v3519_v21  ;;  %v899_v55 = vmul.f32 %v3516_v19, %v3516_v19  ;;  %v900_v20 = vmul.f32 %v3519_v21, %v3519_v21  ;;  %v4207_v19 = vld [vmem:[#allocation18_spill] sm:$0xff] }
 0x235   : > { %v987_v51 = vadd.f32 %v898_v33, %v897_v37  ;;  %v739_v57 = vpop.xlane.xlu0 %738  ;;  %v4205_v37 = vld [vmem:[#allocation17_spill] sm:$0xff] }
 0x236   : > { %v777_v14 = vmul.f32 0.00390625, %v739_v57  ;;  %v990_v63 = vadd.f32 %v900_v20, %v899_v55 }
 0x237   : > { %988 = vadd.xlane.f32.xlu0 %v987_v51  ;;  %v742_v8 = vpop.xlane.xlu1 %741 }
 0x238   : > { %v3530_v59 = vsub.f32 %v4201_v45, %v777_v14  ;;  %v3533_v39 = vsub.f32 %v4203_v13, %v777_v14  ;;  %v778_v7 = vmul.f32 0.00390625, %v742_v8  ;;  %991 = vadd.xlane.f32.xlu1 %v990_v63 }
 0x23a   : > { %4202 = vst [vmem:[#allocation15_spill] sm:$0xff] %v3530_v59  ;;  %4204 = vst [vmem:[#allocation16_spill] sm:$0xff] %v3533_v39  ;;  %v3536_v33 = vsub.f32 %v4205_v37, %v778_v7  ;;  %v3539_v2 = vsub.f32 %v4207_v19, %v778_v7  ;;  %v901_v57 = vmul.f32 %v3530_v59, %v3530_v59  ;;  %v4209_v7 = vld [vmem:[#allocation19_spill] sm:$0xff]  ;;  %v4211_v37 = vld [vmem:[#allocation20_spill] sm:$0xff] }
 0x23b   : > { %v902_v51 = vmul.f32 %v3533_v39, %v3533_v39 }
 0x23c   : > { %4206 = vst [vmem:[#allocation17_spill] sm:$0xff] %v3536_v33  ;;  %4208 = vst [vmem:[#allocation18_spill] sm:$0xff] %v3539_v2  ;;  %v903_v20 = vmul.f32 %v3536_v33, %v3536_v33  ;;  %v904_v14 = vmul.f32 %v3539_v2, %v3539_v2 }
 0x23d   : > { %v993_v55 = vadd.f32 %v902_v51, %v901_v57  ;;  %v745_v63 = vpop.xlane.xlu0 %744  ;;  %v4214_v51 = vld [vmem:[#allocation21_spill] sm:$0xff] }
 0x23e   : > { %v779_v8 = vmul.f32 0.00390625, %v745_v63  ;;  %v996_v45 = vadd.f32 %v904_v14, %v903_v20 }
 0x23f   : > { %994 = vadd.xlane.f32.xlu0 %v993_v55  ;;  %v748_v13 = vpop.xlane.xlu1 %747 }
 0x240   : > { %v3550_v19 = vsub.f32 %v4209_v7, %v779_v8  ;;  %v3553_v59 = vsub.f32 %v4211_v37, %v779_v8  ;;  %v780_v21 = vmul.f32 0.00390625, %v748_v13  ;;  %997 = vadd.xlane.f32.xlu1 %v996_v45 }
 0x242   : > { %4210 = vst [vmem:[#allocation19_spill] sm:$0xff] %v3550_v19  ;;  %4212 = vst [vmem:[#allocation20_spill] sm:$0xff] %v3553_v59  ;;  %v3556_v57 = vsub.f32 %v3241_v25, %v780_v21  ;;  %v3559_v33 = vsub.f32 %v4214_v51, %v780_v21  ;;  %v905_v63 = vmul.f32 %v3550_v19, %v3550_v19 }
 0x243   : > { %v906_v55 = vmul.f32 %v3553_v59, %v3553_v59 }
 0x244   : > { %4213 = vst [vmem:[#allocation31_spill] sm:$0xff] %v3556_v57  ;;  %4215 = vst [vmem:[#allocation21_spill] sm:$0xff] %v3559_v33  ;;  %v907_v14 = vmul.f32 %v3556_v57, %v3556_v57  ;;  %v908_v8 = vmul.f32 %v3559_v33, %v3559_v33 }
 0x245   : > { %v999_v20 = vadd.f32 %v906_v55, %v905_v63 }
 0x246   : > { %v1002_v45 = vadd.f32 %v908_v8, %v907_v14  ;;  %v2505_v14 = vld [vmem:[%s4120_s2 + $0x4] ss:$8 sps:$4 sm:$0xff]  }
 0x247   : > { %1000 = vadd.xlane.f32.xlu0 %v999_v20  ;;  %1389 = vmatprep.mubr.bf16.mxu1 %v2505_v14 }
 0x248   : > { %1003 = vadd.xlane.f32.xlu1 %v1002_v45  ;;  %v4216_v45 = vld [vmem:[#allocation23_spill] sm:$0xff] }
 0x25b   : > { %v911_v25 = vpop.xlane.xlu0 %910 }
 0x25c   : > { %v1005_v13 = vmul.f32 0.00390625, %v911_v25 }
 0x25e   : > { %v1037_v21 = vadd.f32 1e-05, %v1005_v13  ;;  %v4217_v13 = vld [vmem:[#allocation22_spill] sm:$0xff] }
 0x25f   : > { %v914_v7 = vpop.xlane.xlu1 %913 }
 0x260   : > { %2533 = vrsqrt.f32 %v1037_v21  ;;  %v1006_v37 = vmul.f32 0.00390625, %v914_v7 }
 0x262   : > { %v1038_v51 = vadd.f32 1e-05, %v1006_v37 }
 0x263   : > { %v917_v19 = vpop.xlane.xlu0 %916 }
 0x264   : > { %2535 = vrsqrt.f32 %v1038_v51  ;;  %v1007_v59 = vmul.f32 0.00390625, %v917_v19 }
 0x266   : > { %v1039_v63 = vadd.f32 1e-05, %v1007_v59 }
 0x267   : > { %v920_v55 = vpop.xlane.xlu1 %919 }
 0x268   : > { %2537 = vrsqrt.f32 %v1039_v63  ;;  %v1008_v57 = vmul.f32 0.00390625, %v920_v55 }
 0x26a   : > { %v2534_v2 = vpop.eup %2533  ;;  %v1040_v39 = vadd.f32 1e-05, %v1008_v57 }
 0x26b   : > { %v923_v33 = vpop.xlane.xlu0 %922  ;;  %v1102_v25 = vmul.f32 %v2534_v2, %v4216_v45  ;;  %v1101_v21 = vmul.f32 %v2534_v2, %v4217_v13 }
 0x26c   : > { %2539 = vrsqrt.f32 %v1040_v39  ;;  %v1009_v20 = vmul.f32 0.00390625, %v923_v33 }
 0x26d   : > { %v926_v8 = vpop.xlane.xlu1 %925  ;;  %v1166_v33 = vmax.f32 %v1102_v25, 0.0  ;;  %v1165_v63 = vmax.f32 %v1101_v21, 0.0 }
 0x26e   : > { %v2536_v7 = vpop.eup %2535  ;;  %v1041_v19 = vadd.f32 1e-05, %v1009_v20  ;;  %v1010_v59 = vmul.f32 0.00390625, %v926_v8 }
 0x26f   : > { %v1104_v37 = vmul.f32 %v2536_v7, %v3263_v43  ;;  %v1103_v57 = vmul.f32 %v2536_v7, %v3260_v16 }
 0x270   : > { %2541 = vrsqrt.f32 %v1041_v19  ;;  %v1042_v39 = vadd.f32 1e-05, %v1010_v59 }
 0x271   : > { %v1168_v51 = vmax.f32 %v1104_v37, 0.0  ;;  %v1167_v55 = vmax.f32 %v1103_v57, 0.0 }
 0x272   : > { %v2538_v53 = vpop.eup %2537  ;;  %2543 = vrsqrt.f32 %v1042_v39 }
 0x273   : > { %v929_v1 = vpop.xlane.xlu0 %928  ;;  %v1246_v45 = vpack.c.bf16 %v1168_v51, %v1166_v33  ;;  %v1245_v27 = vpack.c.bf16 %v1167_v55, %v1165_v63  ;;  %v1106_v14 = vmul.f32 %v2538_v53, %v3273_v0  ;;  %v1105_v43 = vmul.f32 %v2538_v53, %v3270_v49 }
 0x274   : > { %v1011_v2 = vmul.f32 0.00390625, %v929_v1 }
 0x275   : > { %1357 = vmatprep.subr.bf16.mxu1 %v1246_v45  ;;  %v932_v20 = vpop.xlane.xlu1 %931  ;;  %v1170_v19 = vmax.f32 %v1106_v14, 0.0  ;;  %v1169_v37 = vmax.f32 %v1105_v43, 0.0 }
 0x276   : > { %v2540_v8 = vpop.eup %2539  ;;  %v1043_v16 = vadd.f32 1e-05, %v1011_v2  ;;  %v1012_v13 = vmul.f32 0.00390625, %v932_v20  ;;  %1358 = vmatpush1.bf16.msra.mxu1 %v1245_v27 }
 0x277   : > { %v1108_v25 = vmul.f32 %v2540_v8, %v3283_v61  ;;  %v1107_v21 = vmul.f32 %v2540_v8, %v3280_v12 }
 0x278   : > { %2545 = vrsqrt.f32 %v1043_v16  ;;  %v1044_v7 = vadd.f32 1e-05, %v1012_v13 }
 0x279   : > { %v1172_v59 = vmax.f32 %v1108_v25, 0.0  ;;  %v1171_v1 = vmax.f32 %v1107_v21, 0.0 }
 0x27a   : > { %v2542_v57 = vpop.eup %2541  ;;  %2547 = vrsqrt.f32 %v1044_v7 }
 0x27b   : > { %v935_v39 = vpop.xlane.xlu0 %934  ;;  %v1248_v0 = vpack.c.bf16 %v1172_v59, %v1170_v19  ;;  %v1247_v33 = vpack.c.bf16 %v1171_v1, %v1169_v37  ;;  %v1110_v49 = vmul.f32 %v2542_v57, %v3293_v30  ;;  %v1109_v53 = vmul.f32 %v2542_v57, %v3290_v31 }
 0x27c   : > { %v2544_v27 = vpop.eup %2543  ;;  %v1013_v51 = vmul.f32 0.00390625, %v935_v39 }
 0x27d   : > { %1359 = vmatprep.subr.bf16.mxu1 %v1248_v0  ;;  %v938_v61 = vpop.xlane.xlu1 %937  ;;  %v1112_v12 = vmul.f32 %v2544_v27, %v3299_v6  ;;  %v1111_v63 = vmul.f32 %v2544_v27, %v3296_v26  ;;  %v1174_v2 = vmax.f32 %v1110_v49, 0.0  ;;  %v1173_v14 = vmax.f32 %v1109_v53, 0.0 }
 0x27e   : > { %v1045_v55 = vadd.f32 1e-05, %v1013_v51  ;;  %v1014_v45 = vmul.f32 0.00390625, %v938_v61  ;;  %1360 = vmatpush1.bf16.msra.mxu1 %v1247_v33 }
 0x27f   : > { %v1176_v20 = vmax.f32 %v1112_v12, 0.0  ;;  %v1175_v43 = vmax.f32 %v1111_v63, 0.0 }
 0x280   : > { %2549 = vrsqrt.f32 %v1045_v55  ;;  %v1046_v8 = vadd.f32 1e-05, %v1014_v45 }
 0x281   : > { %v1250_v30 = vpack.c.bf16 %v1176_v20, %v1174_v2  ;;  %v1249_v16 = vpack.c.bf16 %v1175_v43, %v1173_v14 }
 0x282   : > { %v2546_v31 = vpop.eup %2545  ;;  %2551 = vrsqrt.f32 %v1046_v8 }
 0x283   : > { %v941_v13 = vpop.xlane.xlu0 %940  ;;  %1361 = vmatprep.subr.bf16.mxu1 %v1250_v30  ;;  %v1114_v25 = vmul.f32 %v2546_v31, %v3313_v23  ;;  %v1113_v6 = vmul.f32 %v2546_v31, %v3310_v4 }
 0x284   : > { %v2548_v26 = vpop.eup %2547  ;;  %v1015_v21 = vmul.f32 0.00390625, %v941_v13  ;;  %1362 = vmatpush1.bf16.msra.mxu1 %v1249_v16 }
 0x285   : > { %v944_v7 = vpop.xlane.xlu1 %943  ;;  %v1116_v19 = vmul.f32 %v2548_v26, %v3319_v18  ;;  %v1115_v59 = vmul.f32 %v2548_v26, %v3316_v32  ;;  %v1178_v57 = vmax.f32 %v1114_v25, 0.0  ;;  %v1177_v0 = vmax.f32 %v1113_v6, 0.0 }
 0x286   : > { %v1047_v37 = vadd.f32 1e-05, %v1015_v21  ;;  %v1016_v1 = vmul.f32 0.00390625, %v944_v7 }
 0x287   : > { %v1180_v39 = vmax.f32 %v1116_v19, 0.0  ;;  %v1179_v33 = vmax.f32 %v1115_v59, 0.0 }
 0x288   : > { %2553 = vrsqrt.f32 %v1047_v37  ;;  %v1048_v49 = vadd.f32 1e-05, %v1016_v1 }
 0x289   : > { %v1252_v53 = vpack.c.bf16 %v1180_v39, %v1178_v57  ;;  %v1251_v23 = vpack.c.bf16 %v1179_v33, %v1177_v0 }
 0x28a   : > { %v2550_v27 = vpop.eup %2549  ;;  %2555 = vrsqrt.f32 %v1048_v49 }
 0x28b   : > { %v947_v4 = vpop.xlane.xlu0 %946  ;;  %1363 = vmatprep.subr.bf16.mxu1 %v1252_v53  ;;  %v1118_v51 = vmul.f32 %v2550_v27, %v3333_v10  ;;  %v1117_v18 = vmul.f32 %v2550_v27, %v3330_v44 }
 0x28c   : > { %v2552_v61 = vpop.eup %2551  ;;  %v1017_v32 = vmul.f32 0.00390625, %v947_v4  ;;  %1364 = vmatpush1.bf16.msra.mxu1 %v1251_v23 }
 0x28d   : > { %v950_v12 = vpop.xlane.xlu1 %949  ;;  %v1120_v63 = vmul.f32 %v2552_v61, %v3339_v28  ;;  %v1119_v55 = vmul.f32 %v2552_v61, %v3336_v24  ;;  %v1182_v20 = vmax.f32 %v1118_v51, 0.0  ;;  %v1181_v43 = vmax.f32 %v1117_v18, 0.0 }
 0x28e   : > { %v1049_v45 = vadd.f32 1e-05, %v1017_v32  ;;  %v1018_v2 = vmul.f32 0.00390625, %v950_v12 }
 0x28f   : > { %v1184_v14 = vmax.f32 %v1120_v63, 0.0  ;;  %v1183_v8 = vmax.f32 %v1119_v55, 0.0 }
 0x290   : > { %2557 = vrsqrt.f32 %v1049_v45  ;;  %v1050_v30 = vadd.f32 1e-05, %v1018_v2 }
 0x291   : > { %v1254_v16 = vpack.c.bf16 %v1184_v14, %v1182_v20  ;;  %v1253_v10 = vpack.c.bf16 %v1183_v8, %v1181_v43 }
 0x292   : > { %v2554_v31 = vpop.eup %2553  ;;  %2559 = vrsqrt.f32 %v1050_v30 }
 0x293   : > { %v953_v44 = vpop.xlane.xlu0 %952  ;;  %1365 = vmatprep.subr.bf16.mxu1 %v1254_v16  ;;  %v1122_v13 = vmul.f32 %v2554_v31, %v3353_v42  ;;  %v1121_v28 = vmul.f32 %v2554_v31, %v3350_v50 }
 0x294   : > { %v2556_v25 = vpop.eup %2555  ;;  %v1019_v24 = vmul.f32 0.00390625, %v953_v44  ;;  %1366 = vmatpush1.bf16.msra.mxu1 %v1253_v10 }
 0x295   : > { %v956_v6 = vpop.xlane.xlu1 %955  ;;  %v1124_v26 = vmul.f32 %v2556_v25, %v3359_v34  ;;  %v1123_v21 = vmul.f32 %v2556_v25, %v3356_v38  ;;  %v1186_v59 = vmax.f32 %v1122_v13, 0.0  ;;  %v1185_v1 = vmax.f32 %v1121_v28, 0.0 }
 0x296   : > { %v1051_v7 = vadd.f32 1e-05, %v1019_v24  ;;  %v1020_v19 = vmul.f32 0.00390625, %v956_v6 }
 0x297   : > { %v1188_v37 = vmax.f32 %v1124_v26, 0.0  ;;  %v1187_v57 = vmax.f32 %v1123_v21, 0.0 }
 0x298   : > { %2561 = vrsqrt.f32 %v1051_v7  ;;  %v1052_v39 = vadd.f32 1e-05, %v1020_v19 }
 0x299   : > { %v1256_v0 = vpack.c.bf16 %v1188_v37, %v1186_v59  ;;  %v1255_v42 = vpack.c.bf16 %v1187_v57, %v1185_v1 }
 0x29a   : > { %v2558_v33 = vpop.eup %2557  ;;  %2563 = vrsqrt.f32 %v1052_v39 }
 0x29b   : > { %v959_v50 = vpop.xlane.xlu0 %958  ;;  %1367 = vmatprep.subr.bf16.mxu1 %v1256_v0  ;;  %v1126_v49 = vmul.f32 %v2558_v33, %v3373_v48  ;;  %v1125_v34 = vmul.f32 %v2558_v33, %v3370_v56 }
 0x29c   : > { %v2560_v53 = vpop.eup %2559  ;;  %v1021_v38 = vmul.f32 0.00390625, %v959_v50  ;;  %1368 = vmatpush1.bf16.msra.mxu1 %v1255_v42 }
 0x29d   : > { %v962_v23 = vpop.xlane.xlu1 %961  ;;  %v1128_v27 = vmul.f32 %v2560_v53, %v3379_v35  ;;  %v1127_v4 = vmul.f32 %v2560_v53, %v3376_v36  ;;  %v1190_v61 = vmax.f32 %v1126_v49, 0.0  ;;  %v1189_v12 = vmax.f32 %v1125_v34, 0.0 }
 0x29e   : > { %v1053_v51 = vadd.f32 1e-05, %v1021_v38  ;;  %v1022_v18 = vmul.f32 0.00390625, %v962_v23 }
 0x29f   : > { %v1192_v32 = vmax.f32 %v1128_v27, 0.0  ;;  %v1191_v63 = vmax.f32 %v1127_v4, 0.0 }
 0x2a0   : > { %2565 = vrsqrt.f32 %v1053_v51  ;;  %v1054_v55 = vadd.f32 1e-05, %v1022_v18 }
 0x2a1   : > { %v1258_v45 = vpack.c.bf16 %v1192_v32, %v1190_v61  ;;  %v1257_v48 = vpack.c.bf16 %v1191_v63, %v1189_v12 }
 0x2a2   : > { %v2562_v2 = vpop.eup %2561  ;;  %2567 = vrsqrt.f32 %v1054_v55 }
 0x2a3   : > { %v965_v56 = vpop.xlane.xlu0 %964  ;;  %1369 = vmatprep.subr.bf16.mxu1 %v1258_v45  ;;  %v1130_v20 = vmul.f32 %v2562_v2, %v3393_v54  ;;  %v1129_v35 = vmul.f32 %v2562_v2, %v3390_v62 }
 0x2a4   : > { %v2564_v14 = vpop.eup %2563  ;;  %v1023_v36 = vmul.f32 0.00390625, %v965_v56  ;;  %1370 = vmatpush1.bf16.msra.mxu1 %v1257_v48 }
 0x2a5   : > { %v968_v43 = vpop.xlane.xlu1 %967  ;;  %v1132_v8 = vmul.f32 %v2564_v14, %v3399_v40  ;;  %v1131_v30 = vmul.f32 %v2564_v14, %v3396_v29  ;;  %v1194_v31 = vmax.f32 %v1130_v20, 0.0  ;;  %v1193_v13 = vmax.f32 %v1129_v35, 0.0 }
 0x2a6   : > { %v1055_v16 = vadd.f32 1e-05, %v1023_v36  ;;  %v1024_v10 = vmul.f32 0.00390625, %v968_v43 }
 0x2a7   : > { %v1196_v44 = vmax.f32 %v1132_v8, 0.0  ;;  %v1195_v28 = vmax.f32 %v1131_v30, 0.0 }
 0x2a8   : > { %2569 = vrsqrt.f32 %v1055_v16  ;;  %v1056_v25 = vadd.f32 1e-05, %v1024_v10 }
 0x2a9   : > { %v1260_v24 = vpack.c.bf16 %v1196_v44, %v1194_v31  ;;  %v1259_v54 = vpack.c.bf16 %v1195_v28, %v1193_v13  ;;  %v4218_v28 = vld [vmem:[#allocation24_spill] sm:$0xff] }
 0x2aa   : > { %v2566_v6 = vpop.eup %2565  ;;  %2571 = vrsqrt.f32 %v1056_v25 }
 0x2ab   : > { %v971_v62 = vpop.xlane.xlu0 %970  ;;  %1371 = vmatprep.subr.bf16.mxu1 %v1260_v24  ;;  %v1134_v26 = vmul.f32 %v2566_v6, %v3413_v60  ;;  %v1133_v40 = vmul.f32 %v2566_v6, %v3410_v5 }
 0x2ac   : > { %v2568_v21 = vpop.eup %2567  ;;  %v1025_v29 = vmul.f32 0.00390625, %v971_v62  ;;  %1372 = vmatpush1.bf16.msra.mxu1 %v1259_v54  ;;  %v4219_v54 = vld [vmem:[#allocation26_spill] sm:$0xff]  ;;  %v4220_v62 = vld [vmem:[#allocation25_spill] sm:$0xff] }
 0x2ad   : > { %v974_v7 = vpop.xlane.xlu1 %973  ;;  %v1136_v19 = vmul.f32 %v2568_v21, %v3419_v46  ;;  %v1135_v59 = vmul.f32 %v2568_v21, %v3416_v22  ;;  %v1198_v57 = vmax.f32 %v1134_v26, 0.0  ;;  %v1197_v0 = vmax.f32 %v1133_v40, 0.0 }
 0x2ae   : > { %v1057_v37 = vadd.f32 1e-05, %v1025_v29  ;;  %v1026_v1 = vmul.f32 0.00390625, %v974_v7 }
 0x2af   : > { %v1200_v39 = vmax.f32 %v1136_v19, 0.0  ;;  %v1199_v42 = vmax.f32 %v1135_v59, 0.0 }
 0x2b0   : > { %2573 = vrsqrt.f32 %v1057_v37  ;;  %v1058_v33 = vadd.f32 1e-05, %v1026_v1 }
 0x2b1   : > { %v1262_v50 = vpack.c.bf16 %v1200_v39, %v1198_v57  ;;  %v1261_v60 = vpack.c.bf16 %v1199_v42, %v1197_v0  ;;  %v4221_v0 = vld [vmem:[#allocation28_spill] sm:$0xff] }
 0x2b2   : > { %v2570_v49 = vpop.eup %2569  ;;  %2575 = vrsqrt.f32 %v1058_v33  ;;  %v4222_v33 = vld [vmem:[#allocation27_spill] sm:$0xff] }
 0x2b3   : > { %v977_v5 = vpop.xlane.xlu0 %976  ;;  %1373 = vmatprep.subr.bf16.mxu1 %v1262_v50  ;;  %v1138_v34 = vmul.f32 %v2570_v49, %v3433_v3  ;;  %v1137_v46 = vmul.f32 %v2570_v49, %v3430_v11 }
 0x2b4   : > { %v2572_v53 = vpop.eup %2571  ;;  %v1027_v22 = vmul.f32 0.00390625, %v977_v5  ;;  %1374 = vmatpush1.bf16.msra.mxu1 %v1261_v60 }
 0x2b5   : > { %v980_v38 = vpop.xlane.xlu1 %979  ;;  %v1140_v23 = vmul.f32 %v2572_v53, %v3439_v52  ;;  %v1139_v27 = vmul.f32 %v2572_v53, %v3436_v41  ;;  %v1202_v18 = vmax.f32 %v1138_v34, 0.0  ;;  %v1201_v32 = vmax.f32 %v1137_v46, 0.0  ;;  %v4223_v34 = vld [vmem:[#allocation30_spill] sm:$0xff]  ;;  %v4224_v53 = vld [vmem:[#allocation29_spill] sm:$0xff] }
 0x2b6   : > { %v1059_v4 = vadd.f32 1e-05, %v1027_v22  ;;  %v1028_v51 = vmul.f32 0.00390625, %v980_v38 }
 0x2b7   : > { %v1204_v61 = vmax.f32 %v1140_v23, 0.0  ;;  %v1203_v12 = vmax.f32 %v1139_v27, 0.0 }
 0x2b8   : > { %2577 = vrsqrt.f32 %v1059_v4  ;;  %v1060_v63 = vadd.f32 1e-05, %v1028_v51 }
 0x2b9   : > { %v1264_v55 = vpack.c.bf16 %v1204_v61, %v1202_v18  ;;  %v1263_v3 = vpack.c.bf16 %v1203_v12, %v1201_v32 }
 0x2ba   : > { %v2574_v45 = vpop.eup %2573  ;;  %2579 = vrsqrt.f32 %v1060_v63 }
 0x2bb   : > { %1375 = vmatprep.subr.bf16.mxu1 %v1264_v55  ;;  %v1142_v48 = vmul.f32 %v2574_v45, %v3453_v9  ;;  %v1141_v52 = vmul.f32 %v2574_v45, %v3450_v17 }
 0x2bc   : > { %v983_v11 = vpop.xlane.xlu0 %982  ;;  %v2576_v2 = vpop.eup %2575  ;;  %1376 = vmatpush1.bf16.msra.mxu1 %v1263_v3  ;;  %v4225_v3 = vld [vmem:[#allocation12_spill] sm:$0xff] }
 0x2bd   : > { %v1029_v41 = vmul.f32 0.00390625, %v983_v11  ;;  %v986_v56 = vpop.xlane.xlu1 %985  ;;  %v1144_v20 = vmul.f32 %v2576_v2, %v3459_v58  ;;  %v1143_v35 = vmul.f32 %v2576_v2, %v3456_v47  ;;  %v1206_v43 = vmax.f32 %v1142_v48, 0.0  ;;  %v4226_v11 = vld [vmem:[#allocation11_spill] sm:$0xff] }
 0x2be   : > { %v1030_v36 = vmul.f32 0.00390625, %v986_v56  ;;  %v1205_v30 = vmax.f32 %v1141_v52, 0.0  ;;  %v4227_v56 = vld [vmem:[#allocation14_spill] sm:$0xff] }
 0x2bf   : > { %v1061_v14 = vadd.f32 1e-05, %v1029_v41  ;;  %v1208_v8 = vmax.f32 %v1144_v20, 0.0  ;;  %v1207_v16 = vmax.f32 %v1143_v35, 0.0  ;;  %v4228_v35 = vld [vmem:[#allocation13_spill] sm:$0xff] }
 0x2c0   : > { %v1062_v10 = vadd.f32 1e-05, %v1030_v36 }
 0x2c1   : > { %2581 = vrsqrt.f32 %v1061_v14  ;;  %v1266_v31 = vpack.c.bf16 %v1208_v8, %v1206_v43  ;;  %v1265_v9 = vpack.c.bf16 %v1207_v16, %v1205_v30 }
 0x2c2   : > { %v2578_v44 = vpop.eup %2577  ;;  %2583 = vrsqrt.f32 %v1062_v10 }
 0x2c3   : > { %1377 = vmatprep.subr.bf16.mxu1 %v1266_v31  ;;  %v1146_v13 = vmul.f32 %v2578_v44, %v3473_v15  ;;  %v1145_v58 = vmul.f32 %v2578_v44, %v4218_v28 }
 0x2c4   : > { %v989_v17 = vpop.xlane.xlu0 %988  ;;  %v2580_v25 = vpop.eup %2579  ;;  %1378 = vmatpush1.bf16.msra.mxu1 %v1265_v9 }
 0x2c5   : > { %v1031_v47 = vmul.f32 0.00390625, %v989_v17  ;;  %v992_v24 = vpop.xlane.xlu1 %991  ;;  %v1148_v6 = vmul.f32 %v2580_v25, %v4219_v54  ;;  %v1147_v26 = vmul.f32 %v2580_v25, %v4220_v62  ;;  %v1210_v29 = vmax.f32 %v1146_v13, 0.0  ;;  %v4229_v13 = vld [vmem:[#allocation16_spill] sm:$0xff] }
 0x2c6   : > { %v1032_v21 = vmul.f32 0.00390625, %v992_v24  ;;  %v1209_v19 = vmax.f32 %v1145_v58, 0.0  ;;  %v4230_v58 = vld [vmem:[#allocation15_spill] sm:$0xff]  ;;  %v4231_v24 = vld [vmem:[#allocation18_spill] sm:$0xff] }
 0x2c7   : > { %v1063_v40 = vadd.f32 1e-05, %v1031_v47  ;;  %v1212_v7 = vmax.f32 %v1148_v6, 0.0  ;;  %v1211_v59 = vmax.f32 %v1147_v26, 0.0  ;;  %v4232_v6 = vld [vmem:[#allocation17_spill] sm:$0xff] }
 0x2c8   : > { %v1064_v37 = vadd.f32 1e-05, %v1032_v21 }
 0x2c9   : > { %2585 = vrsqrt.f32 %v1063_v40  ;;  %v1268_v1 = vpack.c.bf16 %v1212_v7, %v1210_v29  ;;  %v1267_v15 = vpack.c.bf16 %v1211_v59, %v1209_v19 }
 0x2ca   : > { %2587 = vrsqrt.f32 %v1064_v37  ;;  %v4233_v37 = vld [vmem:[#allocation20_spill] sm:$0xff] }
 0x2cb   : > { %v2582_v57 = vpop.eup %2581  ;;  %1379 = vmatprep.subr.bf16.mxu1 %v1268_v1 }
 0x2cc   : > { %v995_v39 = vpop.xlane.xlu0 %994  ;;  %v1150_v42 = vmul.f32 %v2582_v57, %v4221_v0  ;;  %v1149_v50 = vmul.f32 %v2582_v57, %v4222_v33  ;;  %v2584_v60 = vpop.eup %2583  ;;  %1380 = vmatpush1.bf16.msra.mxu1 %v1267_v15  ;;  %v4234_v15 = vld [vmem:[#allocation19_spill] sm:$0xff]  ;;  %v4235_v0 = vld [vmem:[#allocation21_spill] sm:$0xff] }
 0x2cd   : > { %v1033_v49 = vmul.f32 0.00390625, %v995_v39  ;;  %v998_v5 = vpop.xlane.xlu1 %997  ;;  %v1152_v46 = vmul.f32 %v2584_v60, %v4223_v34  ;;  %v1151_v22 = vmul.f32 %v2584_v60, %v4224_v53  ;;  %v4236_v33 = vld [vmem:[#allocation31_spill] sm:$0xff] }
 0x2ce   : > { %v1034_v23 = vmul.f32 0.00390625, %v998_v5  ;;  %v1214_v27 = vmax.f32 %v1150_v42, 0.0  ;;  %v1213_v51 = vmax.f32 %v1149_v50, 0.0 }
 0x2cf   : > { %v1065_v38 = vadd.f32 1e-05, %v1033_v49  ;;  %v1216_v4 = vmax.f32 %v1152_v46, 0.0  ;;  %v1215_v18 = vmax.f32 %v1151_v22, 0.0  ;;  %v2503_v22 = vld [vmem:[%s4120_s2] ss:$8 sps:$4 sm:$0xff]  }
 0x2d0   : > { %v1066_v61 = vadd.f32 1e-05, %v1034_v23  ;;  %v2508_v23 = vld [vmem:[%s4120_s2 + $0x10] ss:$8 sps:$4 sm:$0xff]  }
 0x2d1   : > { %2589 = vrsqrt.f32 %v1065_v38  ;;  %v1270_v32 = vpack.c.bf16 %v1216_v4, %v1214_v27  ;;  %v1269_v12 = vpack.c.bf16 %v1215_v18, %v1213_v51  ;;  %v2506_v38 = vld [vmem:[%s4120_s2 + $0x14] ss:$8 sps:$4 sm:$0xff]   ;;  %v2509_v27 = vld [vmem:[%s4120_s2 + $0x24] ss:$8 sps:$4 sm:$0xff]   ;;  %v2511_v4 = vld [vmem:[%s4120_s2 + $0x20] ss:$8 sps:$4 sm:$0xff]  }
 0x2d2   : > { %2591 = vrsqrt.f32 %v1066_v61  ;;  %v2512_v51 = vld [vmem:[%s4120_s2 + $0x34] ss:$8 sps:$4 sm:$0xff]   ;;  %v2514_v18 = vld [vmem:[%s4120_s2 + $0x30] ss:$8 sps:$4 sm:$0xff]   ;;  %v2515_v61 = vld [vmem:[%s4120_s2 + $0x44] ss:$8 sps:$4 sm:$0xff]  }
 0x2d3   : > { %v2586_v63 = vpop.eup %2585  ;;  %1381 = vmatprep.subr.bf16.mxu1 %v1270_v32  ;;  %v2517_v32 = vld [vmem:[%s4120_s2 + $0x40] ss:$8 sps:$4 sm:$0xff]  }
 0x2d4   : > { %v1001_v55 = vpop.xlane.xlu0 %1000  ;;  %v1154_v45 = vmul.f32 %v2586_v63, %v4225_v3  ;;  %v1153_v48 = vmul.f32 %v2586_v63, %v4226_v11  ;;  %v2588_v52 = vpop.eup %2587  ;;  %1382 = vmatpush1.bf16.msra.mxu1 %v1269_v12  ;;  %v2518_v12 = vld [vmem:[%s4120_s2 + $0x54] ss:$8 sps:$4 sm:$0xff]   ;;  %v2520_v63 = vld [vmem:[%s4120_s2 + $0x50] ss:$8 sps:$4 sm:$0xff]   ;;  %v2523_v3 = vld [vmem:[%s4120_s2 + $0x60] ss:$8 sps:$4 sm:$0xff]  }
 0x2d5   : > { %v1035_v2 = vmul.f32 0.00390625, %v1001_v55  ;;  %v1004_v41 = vpop.xlane.xlu1 %1003  ;;  %v1156_v20 = vmul.f32 %v2588_v52, %v4227_v56  ;;  %v1155_v14 = vmul.f32 %v2588_v52, %v4228_v35  ;;  %v2521_v55 = vld [vmem:[%s4120_s2 + $0x64] ss:$8 sps:$4 sm:$0xff]   ;;  %v2526_v11 = vld [vmem:[%s4120_s2 + $0x70] ss:$8 sps:$4 sm:$0xff]  }
 0x2d6   : > { %v1036_v43 = vmul.f32 0.00390625, %v1004_v41  ;;  %v1218_v8 = vmax.f32 %v1154_v45, 0.0  ;;  %v1217_v16 = vmax.f32 %v1153_v48, 0.0  ;;  %v2524_v45 = vld [vmem:[%s4120_s2 + $0x74] ss:$8 sps:$4 sm:$0xff]   ;;  %v4237_v48 = vmov 0  }
 0x2d7   : > { %v1067_v36 = vadd.f32 1e-05, %v1035_v2  ;;  %v1220_v30 = vmax.f32 %v1156_v20, 0.0  ;;  %v1219_v10 = vmax.f32 %v1155_v14, 0.0 }
 0x2d8   : > { %v1068_v31 = vadd.f32 1e-05, %v1036_v43 }
 0x2d9   : > { %2593 = vrsqrt.f32 %v1067_v36  ;;  %v1272_v9 = vpack.c.bf16 %v1220_v30, %v1218_v8  ;;  %v1271_v44 = vpack.c.bf16 %v1219_v10, %v1217_v16 }
 0x2da   : > { %2595 = vrsqrt.f32 %v1068_v31 }
 0x2db   : > { %v2590_v17 = vpop.eup %2589  ;;  %1383 = vmatprep.subr.bf16.mxu1 %v1272_v9 }
 0x2dc   : > { %v1158_v28 = vmul.f32 %v2590_v17, %v4229_v13  ;;  %v1157_v25 = vmul.f32 %v2590_v17, %v4230_v58  ;;  %v2592_v47 = vpop.eup %2591  ;;  %1384 = vmatpush1.bf16.msra.mxu1 %v1271_v44 }
 0x2dd   : > { %v1160_v54 = vmul.f32 %v2592_v47, %v4231_v24  ;;  %v1159_v62 = vmul.f32 %v2592_v47, %v4232_v6 }
 0x2de   : > { %v1222_v26 = vmax.f32 %v1158_v28, 0.0  ;;  %v1221_v21 = vmax.f32 %v1157_v25, 0.0 }
 0x2df   : > { %v1224_v40 = vmax.f32 %v1160_v54, 0.0  ;;  %v1223_v29 = vmax.f32 %v1159_v62, 0.0 }
 0x2e1   : > { %v1274_v7 = vpack.c.bf16 %v1224_v40, %v1222_v26  ;;  %v1273_v19 = vpack.c.bf16 %v1223_v29, %v1221_v21 }
 0x2e3   : > { %v2594_v59 = vpop.eup %2593  ;;  %1385 = vmatprep.subr.bf16.mxu1 %v1274_v7 }
 0x2e4   : > { %v1162_v1 = vmul.f32 %v2594_v59, %v4233_v37  ;;  %v1161_v57 = vmul.f32 %v2594_v59, %v4234_v15  ;;  %v2596_v39 = vpop.eup %2595  ;;  %1386 = vmatpush1.bf16.msra.mxu1 %v1273_v19 }
 0x2e5   : > { %v1164_v42 = vmul.f32 %v2596_v39, %v4235_v0  ;;  %v1163_v50 = vmul.f32 %v2596_v39, %v4236_v33 }
 0x2e6   : > { %v1226_v60 = vmax.f32 %v1162_v1, 0.0  ;;  %v1225_v5 = vmax.f32 %v1161_v57, 0.0 }
 0x2e7   : > { %v1228_v49 = vmax.f32 %v1164_v42, 0.0  ;;  %v1227_v34 = vmax.f32 %v1163_v50, 0.0 }
 0x2e9   : > { %v1276_v46 = vpack.c.bf16 %v1228_v49, %v1226_v60  ;;  %v1275_v53 = vpack.c.bf16 %v1227_v34, %v1225_v5 }
 0x2eb   : > { %1387 = vmatprep.subr.bf16.mxu1 %v1276_v46 }
 0x2ec   : > { %1388 = vmatpush1.bf16.msra.mxu1 %v1275_v53 }
 0x2ef   : > { %1390 = vmatmul.mubr.bf16.vlgmr.msra.gmra.mrb[0].mxu1 %v2503_v22 }
 0x2f0   : > { %1399 = vmatprep.mubr.bf16.mxu1 %v2506_v38 }
 0x2f7   : > { %1400 = vmatmul.mubr.bf16.gmra.mrb[4].mxu1 %v2508_v23 }
 0x2f8   : > { %1409 = vmatprep.mubr.bf16.mxu1 %v2509_v27 }
 0x2ff   : > { %1410 = vmatmul.mubr.bf16.gmra.mrb[8].mxu1 %v2511_v4 }
 0x300   : > { %1419 = vmatprep.mubr.bf16.mxu1 %v2512_v51 }
 0x307   : > { %1420 = vmatmul.mubr.bf16.gmra.mrb[12].mxu1 %v2514_v18 }
 0x308   : > { %1429 = vmatprep.mubr.bf16.mxu1 %v2515_v61 }
 0x30f   : > { %1430 = vmatmul.mubr.bf16.gmra.mrb[16].mxu1 %v2517_v32 }
 0x310   : > { %1439 = vmatprep.mubr.bf16.mxu1 %v2518_v12 }
 0x317   : > { %1440 = vmatmul.mubr.bf16.gmra.mrb[20].mxu1 %v2520_v63 }
 0x318   : > { %1449 = vmatprep.mubr.bf16.mxu1 %v2521_v55 }
 0x31f   : > { %1450 = vmatmul.mubr.bf16.gmra.mrb[24].mxu1 %v2523_v3 }
 0x320   : > { %1459 = vmatprep.mubr.bf16.mxu1 %v2524_v45 }
 0x327   : > { %1460 = vmatmul.mubr.bf16.gmra.mrb[28].mxu1 %v2526_v11 }
 0x328   : > { %1838 = vmatprep.mubr.bf16.mxu1 %v4237_v48 }
 0x3c2   : > { %v3682_v52 = vpop.f32.mrb[0].mxu1 }
 0x3c3   : > { %v3684_v2 = vpop.f32.mrb[1].mxu1 }
 0x3c4   : > { %v3686_v41 = vpop.f32.mrb[2].mxu1  ;;  %v1470_v56 = vadd.f32 %v3684_v2, %v3682_v52 }
 0x3c5   : > { %v3690_v20 = vpop.f32.mrb[3].mxu1 }
 0x3c6   : > { %1471 = vadd.xlane.f32.xlu0 %v1470_v56  ;;  %v1473_v35 = vadd.f32 %v3690_v20, %v3686_v41 }
 0x3c8   : > { %1474 = vadd.xlane.f32.xlu1 %v1473_v35 }
 0x3ca   : > { %v3694_v14 = vpop.f32.mrb[4].mxu1 }
 0x3cb   : > { %v3696_v36 = vpop.f32.mrb[5].mxu1 }
 0x3cc   : > { %v3698_v43 = vpop.f32.mrb[6].mxu1  ;;  %v1476_v8 = vadd.f32 %v3696_v36, %v3694_v14 }
 0x3cd   : > { %v3702_v30 = vpop.f32.mrb[7].mxu1 }
 0x3ce   : > { %1477 = vadd.xlane.f32.xlu0 %v1476_v8  ;;  %v1479_v16 = vadd.f32 %v3702_v30, %v3698_v43 }
 0x3d0   : > { %1480 = vadd.xlane.f32.xlu1 %v1479_v16 }
 0x3d2   : > { %v3706_v10 = vpop.f32.mrb[8].mxu1 }
 0x3d3   : > { %v3708_v31 = vpop.f32.mrb[9].mxu1 }
 0x3d4   : > { %v3710_v9 = vpop.f32.mrb[10].mxu1  ;;  %v1482_v44 = vadd.f32 %v3708_v31, %v3706_v10 }
 0x3d5   : > { %v3714_v17 = vpop.f32.mrb[11].mxu1 }
 0x3d6   : > { %1483 = vadd.xlane.f32.xlu0 %v1482_v44  ;;  %v1485_v13 = vadd.f32 %v3714_v17, %v3710_v9 }
 0x3d8   : > { %1486 = vadd.xlane.f32.xlu1 %v1485_v13 }
 0x3da   : > { %v3718_v28 = vpop.f32.mrb[12].mxu1 }
 0x3db   : > { %v3720_v58 = vpop.f32.mrb[13].mxu1 }
 0x3dc   : > { %v3722_v25 = vpop.f32.mrb[14].mxu1  ;;  %v1488_v47 = vadd.f32 %v3720_v58, %v3718_v28 }
 0x3dd   : > { %v3726_v24 = vpop.f32.mrb[15].mxu1 }
 0x3de   : > { %1489 = vadd.xlane.f32.xlu0 %v1488_v47  ;;  %v1491_v54 = vadd.f32 %v3726_v24, %v3722_v25 }
 0x3e0   : > { %1492 = vadd.xlane.f32.xlu1 %v1491_v54 }
 0x3e2   : > { %v3730_v6 = vpop.f32.mrb[16].mxu1 }
 0x3e3   : > { %v3732_v62 = vpop.f32.mrb[17].mxu1 }
 0x3e4   : > { %v3734_v26 = vpop.f32.mrb[18].mxu1  ;;  %v1494_v40 = vadd.f32 %v3732_v62, %v3730_v6 }
 0x3e5   : > { %v3738_v21 = vpop.f32.mrb[19].mxu1 }
 0x3e6   : > { %1495 = vadd.xlane.f32.xlu0 %v1494_v40  ;;  %v1497_v29 = vadd.f32 %v3738_v21, %v3734_v26 }
 0x3e8   : > { %1498 = vadd.xlane.f32.xlu1 %v1497_v29 }
 0x3ea   : > { %v3742_v7 = vpop.f32.mrb[20].mxu1 }
 0x3eb   : > { %v3744_v19 = vpop.f32.mrb[21].mxu1 }
 0x3ec   : > { %v3746_v59 = vpop.f32.mrb[22].mxu1  ;;  %v1500_v37 = vadd.f32 %v3744_v19, %v3742_v7 }
 0x3ed   : > { %v3750_v1 = vpop.f32.mrb[23].mxu1 }
 0x3ee   : > { %1501 = vadd.xlane.f32.xlu0 %v1500_v37  ;;  %v1503_v15 = vadd.f32 %v3750_v1, %v3746_v59 }
 0x3f0   : > { %1504 = vadd.xlane.f32.xlu1 %v1503_v15 }
 0x3f2   : > { %v3754_v57 = vpop.f32.mrb[24].mxu1 }
 0x3f3   : > { %v3756_v39 = vpop.f32.mrb[25].mxu1 }
 0x3f4   : > { %v3758_v0 = vpop.f32.mrb[26].mxu1  ;;  %v1506_v42 = vadd.f32 %v3756_v39, %v3754_v57 }
 0x3f5   : > { %v3762_v33 = vpop.f32.mrb[27].mxu1 }
 0x3f6   : > { %1507 = vadd.xlane.f32.xlu0 %v1506_v42  ;;  %v1509_v50 = vadd.f32 %v3762_v33, %v3758_v0 }
 0x3f8   : > { %1510 = vadd.xlane.f32.xlu1 %v1509_v50 }
 0x3fa   : > { %v3766_v60 = vpop.f32.mrb[28].mxu1 }
 0x3fb   : > { %v3768_v49 = vpop.f32.mrb[29].mxu1 }
 0x3fc   : > { %v3770_v5 = vpop.f32.mrb[30].mxu1  ;;  %v1512_v34 = vadd.f32 %v3768_v49, %v3766_v60 }
 0x3fd   : > { %v3774_v46 = vpop.f32.mrb[31].mxu1 }
 0x3fe   : > { %1513 = vadd.xlane.f32.xlu0 %v1512_v34  ;;  %v1515_v53 = vadd.f32 %v3774_v46, %v3770_v5 }
 0x400   : > { %1516 = vadd.xlane.f32.xlu1 %v1515_v53 }
 0x453   : > { %v1472_v22 = vpop.xlane.xlu0 %1471 }
 0x454   : > { %v1518_v38 = vmul.f32 0.00390625, %v1472_v22 }
 0x455   : > { %v1475_v23 = vpop.xlane.xlu1 %1474 }
 0x456   : > { %v3779_v27 = vsub.f32 %v3682_v52, %v1518_v38  ;;  %v3782_v4 = vsub.f32 %v3684_v2, %v1518_v38  ;;  %v1519_v51 = vmul.f32 0.00390625, %v1475_v23 }
 0x458   : > { %v3785_v18 = vsub.f32 %v3686_v41, %v1519_v51  ;;  %v3788_v61 = vsub.f32 %v3690_v20, %v1519_v51  ;;  %v1566_v32 = vmul.f32 %v3779_v27, %v3779_v27  ;;  %v1567_v12 = vmul.f32 %v3782_v4, %v3782_v4 }
 0x45a   : > { %v1598_v63 = vadd.f32 %v1567_v12, %v1566_v32  ;;  %v1568_v55 = vmul.f32 %v3785_v18, %v3785_v18  ;;  %v1569_v3 = vmul.f32 %v3788_v61, %v3788_v61 }
 0x45b   : > { %v1478_v45 = vpop.xlane.xlu0 %1477 }
 0x45c   : > { %v1520_v11 = vmul.f32 0.00390625, %v1478_v45  ;;  %1599 = vadd.xlane.f32.xlu0 %v1598_v63  ;;  %v1601_v52 = vadd.f32 %v1569_v3, %v1568_v55 }
 0x45d   : > { %v1481_v2 = vpop.xlane.xlu1 %1480 }
 0x45e   : > { %v3799_v41 = vsub.f32 %v3694_v14, %v1520_v11  ;;  %v3802_v56 = vsub.f32 %v3696_v36, %v1520_v11  ;;  %v1521_v20 = vmul.f32 0.00390625, %v1481_v2  ;;  %1602 = vadd.xlane.f32.xlu1 %v1601_v52 }
 0x460   : > { %v3805_v35 = vsub.f32 %v3698_v43, %v1521_v20  ;;  %v3808_v8 = vsub.f32 %v3702_v30, %v1521_v20  ;;  %v1570_v16 = vmul.f32 %v3799_v41, %v3799_v41  ;;  %v1571_v44 = vmul.f32 %v3802_v56, %v3802_v56 }
 0x462   : > { %v1604_v13 = vadd.f32 %v1571_v44, %v1570_v16  ;;  %v1572_v14 = vmul.f32 %v3805_v35, %v3805_v35  ;;  %v1573_v36 = vmul.f32 %v3808_v8, %v3808_v8 }
 0x463   : > { %v1484_v47 = vpop.xlane.xlu0 %1483 }
 0x464   : > { %v1522_v54 = vmul.f32 0.00390625, %v1484_v47  ;;  %1605 = vadd.xlane.f32.xlu0 %v1604_v13  ;;  %v1607_v43 = vadd.f32 %v1573_v36, %v1572_v14 }
 0x465   : > { %v1487_v40 = vpop.xlane.xlu1 %1486 }
 0x466   : > { %v3819_v30 = vsub.f32 %v3706_v10, %v1522_v54  ;;  %v3822_v29 = vsub.f32 %v3708_v31, %v1522_v54  ;;  %v1523_v37 = vmul.f32 0.00390625, %v1487_v40  ;;  %1608 = vadd.xlane.f32.xlu1 %v1607_v43 }
 0x468   : > { %v3825_v15 = vsub.f32 %v3710_v9, %v1523_v37  ;;  %v3828_v42 = vsub.f32 %v3714_v17, %v1523_v37  ;;  %v1574_v50 = vmul.f32 %v3819_v30, %v3819_v30  ;;  %v1575_v34 = vmul.f32 %v3822_v29, %v3822_v29 }
 0x46a   : > { %v1610_v53 = vadd.f32 %v1575_v34, %v1574_v50  ;;  %v1576_v10 = vmul.f32 %v3825_v15, %v3825_v15  ;;  %v1577_v31 = vmul.f32 %v3828_v42, %v3828_v42 }
 0x46b   : > { %v1490_v22 = vpop.xlane.xlu0 %1489 }
 0x46c   : > { %v1524_v38 = vmul.f32 0.00390625, %v1490_v22  ;;  %1611 = vadd.xlane.f32.xlu0 %v1610_v53  ;;  %v1613_v9 = vadd.f32 %v1577_v31, %v1576_v10 }
 0x46d   : > { %v1493_v23 = vpop.xlane.xlu1 %1492 }
 0x46e   : > { %v3839_v17 = vsub.f32 %v3718_v28, %v1524_v38  ;;  %v3842_v51 = vsub.f32 %v3720_v58, %v1524_v38  ;;  %v1525_v32 = vmul.f32 0.00390625, %v1493_v23  ;;  %1614 = vadd.xlane.f32.xlu1 %v1613_v9 }
 0x470   : > { %v3845_v12 = vsub.f32 %v3722_v25, %v1525_v32  ;;  %v3848_v63 = vsub.f32 %v3726_v24, %v1525_v32  ;;  %v1578_v55 = vmul.f32 %v3839_v17, %v3839_v17  ;;  %v1579_v3 = vmul.f32 %v3842_v51, %v3842_v51 }
 0x472   : > { %v1616_v45 = vadd.f32 %v1579_v3, %v1578_v55  ;;  %v1580_v28 = vmul.f32 %v3845_v12, %v3845_v12  ;;  %v1581_v58 = vmul.f32 %v3848_v63, %v3848_v63 }
 0x473   : > { %v1496_v11 = vpop.xlane.xlu0 %1495 }
 0x474   : > { %v1526_v52 = vmul.f32 0.00390625, %v1496_v11  ;;  %1617 = vadd.xlane.f32.xlu0 %v1616_v45  ;;  %v1619_v25 = vadd.f32 %v1581_v58, %v1580_v28 }
 0x475   : > { %v1499_v2 = vpop.xlane.xlu1 %1498 }
 0x476   : > { %v3859_v24 = vsub.f32 %v3730_v6, %v1526_v52  ;;  %v3862_v20 = vsub.f32 %v3732_v62, %v1526_v52  ;;  %v1527_v16 = vmul.f32 0.00390625, %v1499_v2  ;;  %1620 = vadd.xlane.f32.xlu1 %v1619_v25 }
 0x478   : > { %v3865_v44 = vsub.f32 %v3734_v26, %v1527_v16  ;;  %v3868_v13 = vsub.f32 %v3738_v21, %v1527_v16  ;;  %v1582_v14 = vmul.f32 %v3859_v24, %v3859_v24  ;;  %v1583_v36 = vmul.f32 %v3862_v20, %v3862_v20 }
 0x47a   : > { %v1622_v47 = vadd.f32 %v1583_v36, %v1582_v14  ;;  %v1584_v6 = vmul.f32 %v3865_v44, %v3865_v44  ;;  %v1585_v62 = vmul.f32 %v3868_v13, %v3868_v13 }
 0x47b   : > { %v1502_v54 = vpop.xlane.xlu0 %1501 }
 0x47c   : > { %v1528_v43 = vmul.f32 0.00390625, %v1502_v54  ;;  %1623 = vadd.xlane.f32.xlu0 %v1622_v47  ;;  %v1625_v26 = vadd.f32 %v1585_v62, %v1584_v6 }
 0x47d   : > { %v1505_v40 = vpop.xlane.xlu1 %1504 }
 0x47e   : > { %v3879_v21 = vsub.f32 %v3742_v7, %v1528_v43  ;;  %v3882_v37 = vsub.f32 %v3744_v19, %v1528_v43  ;;  %v1529_v50 = vmul.f32 0.00390625, %v1505_v40  ;;  %1626 = vadd.xlane.f32.xlu1 %v1625_v26 }
 0x480   : > { %v3885_v34 = vsub.f32 %v3746_v59, %v1529_v50  ;;  %v3888_v53 = vsub.f32 %v3750_v1, %v1529_v50  ;;  %v1586_v10 = vmul.f32 %v3879_v21, %v3879_v21  ;;  %v1587_v31 = vmul.f32 %v3882_v37, %v3882_v37 }
 0x482   : > { %v1628_v22 = vadd.f32 %v1587_v31, %v1586_v10  ;;  %v1588_v7 = vmul.f32 %v3885_v34, %v3885_v34  ;;  %v1589_v19 = vmul.f32 %v3888_v53, %v3888_v53 }
 0x483   : > { %v1508_v38 = vpop.xlane.xlu0 %1507 }
 0x484   : > { %v1530_v9 = vmul.f32 0.00390625, %v1508_v38  ;;  %1629 = vadd.xlane.f32.xlu0 %v1628_v22  ;;  %v1631_v59 = vadd.f32 %v1589_v19, %v1588_v7 }
 0x485   : > { %v1511_v23 = vpop.xlane.xlu1 %1510 }
 0x486   : > { %v3899_v1 = vsub.f32 %v3754_v57, %v1530_v9  ;;  %v3902_v32 = vsub.f32 %v3756_v39, %v1530_v9  ;;  %v1531_v55 = vmul.f32 0.00390625, %v1511_v23  ;;  %1632 = vadd.xlane.f32.xlu1 %v1631_v59 }
 0x488   : > { %v3905_v3 = vsub.f32 %v3758_v0, %v1531_v55  ;;  %v3908_v45 = vsub.f32 %v3762_v33, %v1531_v55  ;;  %v1590_v28 = vmul.f32 %v3899_v1, %v3899_v1  ;;  %v1591_v58 = vmul.f32 %v3902_v32, %v3902_v32 }
 0x48a   : > { %v1634_v11 = vadd.f32 %v1591_v58, %v1590_v28  ;;  %v1592_v57 = vmul.f32 %v3905_v3, %v3905_v3  ;;  %v1593_v39 = vmul.f32 %v3908_v45, %v3908_v45 }
 0x48b   : > { %v1514_v52 = vpop.xlane.xlu0 %1513 }
 0x48c   : > { %v1532_v25 = vmul.f32 0.00390625, %v1514_v52  ;;  %1635 = vadd.xlane.f32.xlu0 %v1634_v11  ;;  %v1637_v0 = vadd.f32 %v1593_v39, %v1592_v57 }
 0x48d   : > { %v1517_v2 = vpop.xlane.xlu1 %1516 }
 0x48e   : > { %v3919_v33 = vsub.f32 %v3766_v60, %v1532_v25  ;;  %v3922_v16 = vsub.f32 %v3768_v49, %v1532_v25  ;;  %v1533_v14 = vmul.f32 0.00390625, %v1517_v2  ;;  %1638 = vadd.xlane.f32.xlu1 %v1637_v0 }
 0x490   : > { %v3925_v36 = vsub.f32 %v3770_v5, %v1533_v14  ;;  %v3928_v47 = vsub.f32 %v3774_v46, %v1533_v14  ;;  %v1594_v6 = vmul.f32 %v3919_v33, %v3919_v33  ;;  %v1595_v62 = vmul.f32 %v3922_v16, %v3922_v16 }
 0x492   : > { %v1640_v54 = vadd.f32 %v1595_v62, %v1594_v6  ;;  %v1596_v60 = vmul.f32 %v3925_v36, %v3925_v36  ;;  %v1597_v49 = vmul.f32 %v3928_v47, %v3928_v47 }
 0x494   : > { %1641 = vadd.xlane.f32.xlu0 %v1640_v54  ;;  %v1643_v43 = vadd.f32 %v1597_v49, %v1596_v60 }
 0x496   : > { %1644 = vadd.xlane.f32.xlu1 %v1643_v43 }
 0x4e9   : > { %v1600_v5 = vpop.xlane.xlu0 %1599 }
 0x4ea   : > { %v1646_v26 = vmul.f32 0.00390625, %v1600_v5 }
 0x4eb   : > { %v1603_v46 = vpop.xlane.xlu1 %1602 }
 0x4ec   : > { %v1662_v40 = vadd.f32 1e-05, %v1646_v26  ;;  %v1647_v50 = vmul.f32 0.00390625, %v1603_v46 }
 0x4ee   : > { %2597 = vrsqrt.f32 %v1662_v40  ;;  %v1663_v10 = vadd.f32 1e-05, %v1647_v50 }
 0x4f0   : > { %2599 = vrsqrt.f32 %v1663_v10 }
 0x4f1   : > { %v1606_v31 = vpop.xlane.xlu0 %1605 }
 0x4f2   : > { %v1648_v22 = vmul.f32 0.00390625, %v1606_v31 }
 0x4f3   : > { %v1609_v7 = vpop.xlane.xlu1 %1608 }
 0x4f4   : > { %v1664_v19 = vadd.f32 1e-05, %v1648_v22  ;;  %v1649_v38 = vmul.f32 0.00390625, %v1609_v7 }
 0x4f6   : > { %2601 = vrsqrt.f32 %v1664_v19  ;;  %v1665_v9 = vadd.f32 1e-05, %v1649_v38 }
 0x4f8   : > { %v2598_v59 = vpop.eup %2597  ;;  %2603 = vrsqrt.f32 %v1665_v9 }
 0x4f9   : > { %v1612_v23 = vpop.xlane.xlu0 %1611  ;;  %v1695_v55 = vmul.f32 %v2598_v59, %v3782_v4  ;;  %v1694_v28 = vmul.f32 %v2598_v59, %v3779_v27 }
 0x4fa   : > { %v2600_v58 = vpop.eup %2599  ;;  %v1650_v11 = vmul.f32 0.00390625, %v1612_v23 }
 0x4fb   : > { %v1615_v57 = vpop.xlane.xlu1 %1614  ;;  %v1697_v39 = vmul.f32 %v2600_v58, %v3788_v61  ;;  %v1696_v52 = vmul.f32 %v2600_v58, %v3785_v18  ;;  %v1727_v2 = vmax.f32 %v1695_v55, 0.0  ;;  %v1726_v6 = vmax.f32 %v1694_v28, 0.0 }
 0x4fc   : > { %v1666_v25 = vadd.f32 1e-05, %v1650_v11  ;;  %v1651_v0 = vmul.f32 0.00390625, %v1615_v57 }
 0x4fd   : > { %v1729_v14 = vmax.f32 %v1697_v39, 0.0  ;;  %v1728_v62 = vmax.f32 %v1696_v52, 0.0 }
 0x4fe   : > { %2605 = vrsqrt.f32 %v1666_v25  ;;  %v1667_v54 = vadd.f32 1e-05, %v1651_v0 }
 0x4ff   : > { %v1767_v60 = vpack.c.bf16 %v1729_v14, %v1727_v2  ;;  %v1766_v49 = vpack.c.bf16 %v1728_v62, %v1726_v6 }
 0x500   : > { %v2602_v4 = vpop.eup %2601  ;;  %2607 = vrsqrt.f32 %v1667_v54 }
 0x501   : > { %v1618_v27 = vpop.xlane.xlu0 %1617  ;;  %1806 = vmatprep.subr.bf16.mxu1 %v1767_v60  ;;  %v1699_v43 = vmul.f32 %v2602_v4, %v3802_v56  ;;  %v1698_v61 = vmul.f32 %v2602_v4, %v3799_v41 }
 0x502   : > { %v2604_v5 = vpop.eup %2603  ;;  %v1652_v18 = vmul.f32 0.00390625, %v1618_v27  ;;  %1807 = vmatpush1.bf16.msra.mxu1 %v1766_v49 }
 0x503   : > { %v1621_v26 = vpop.xlane.xlu1 %1620  ;;  %v1701_v46 = vmul.f32 %v2604_v5, %v3808_v8  ;;  %v1700_v40 = vmul.f32 %v2604_v5, %v3805_v35  ;;  %v1731_v31 = vmax.f32 %v1699_v43, 0.0  ;;  %v1730_v7 = vmax.f32 %v1698_v61, 0.0 }
 0x504   : > { %v1668_v50 = vadd.f32 1e-05, %v1652_v18  ;;  %v1653_v10 = vmul.f32 0.00390625, %v1621_v26 }
 0x505   : > { %v1733_v22 = vmax.f32 %v1701_v46, 0.0  ;;  %v1732_v19 = vmax.f32 %v1700_v40, 0.0 }
 0x506   : > { %2609 = vrsqrt.f32 %v1668_v50  ;;  %v1669_v38 = vadd.f32 1e-05, %v1653_v10 }
 0x507   : > { %v1769_v9 = vpack.c.bf16 %v1733_v22, %v1731_v31  ;;  %v1768_v56 = vpack.c.bf16 %v1732_v19, %v1730_v7 }
 0x508   : > { %v2606_v59 = vpop.eup %2605  ;;  %2611 = vrsqrt.f32 %v1669_v38 }
 0x509   : > { %v1624_v41 = vpop.xlane.xlu0 %1623  ;;  %1808 = vmatprep.subr.bf16.mxu1 %v1769_v9  ;;  %v1703_v23 = vmul.f32 %v2606_v59, %v3822_v29  ;;  %v1702_v8 = vmul.f32 %v2606_v59, %v3819_v30 }
 0x50a   : > { %v2608_v55 = vpop.eup %2607  ;;  %v1654_v35 = vmul.f32 0.00390625, %v1624_v41  ;;  %1809 = vmatpush1.bf16.msra.mxu1 %v1768_v56 }
 0x50b   : > { %v1627_v28 = vpop.xlane.xlu1 %1626  ;;  %v1705_v58 = vmul.f32 %v2608_v55, %v3828_v42  ;;  %v1704_v11 = vmul.f32 %v2608_v55, %v3825_v15  ;;  %v1735_v52 = vmax.f32 %v1703_v23, 0.0  ;;  %v1734_v0 = vmax.f32 %v1702_v8, 0.0 }
 0x50c   : > { %v1670_v57 = vadd.f32 1e-05, %v1654_v35  ;;  %v1655_v39 = vmul.f32 0.00390625, %v1627_v28 }
 0x50d   : > { %v1737_v25 = vmax.f32 %v1705_v58, 0.0  ;;  %v1736_v2 = vmax.f32 %v1704_v11, 0.0 }
 0x50e   : > { %2613 = vrsqrt.f32 %v1670_v57  ;;  %v1671_v14 = vadd.f32 1e-05, %v1655_v39 }
 0x50f   : > { %v1771_v6 = vpack.c.bf16 %v1737_v25, %v1735_v52  ;;  %v1770_v29 = vpack.c.bf16 %v1736_v2, %v1734_v0 }
 0x510   : > { %v2610_v62 = vpop.eup %2609  ;;  %2615 = vrsqrt.f32 %v1671_v14 }
 0x511   : > { %v1630_v30 = vpop.xlane.xlu0 %1629  ;;  %1810 = vmatprep.subr.bf16.mxu1 %v1771_v6  ;;  %v1707_v54 = vmul.f32 %v2610_v62, %v3842_v51  ;;  %v1706_v42 = vmul.f32 %v2610_v62, %v3839_v17 }
 0x512   : > { %v2612_v60 = vpop.eup %2611  ;;  %v1656_v15 = vmul.f32 0.00390625, %v1630_v30  ;;  %1811 = vmatpush1.bf16.msra.mxu1 %v1770_v29 }
 0x513   : > { %v1633_v49 = vpop.xlane.xlu1 %1632  ;;  %v1709_v4 = vmul.f32 %v2612_v60, %v3848_v63  ;;  %v1708_v27 = vmul.f32 %v2612_v60, %v3845_v12  ;;  %v1739_v5 = vmax.f32 %v1707_v54, 0.0  ;;  %v1738_v26 = vmax.f32 %v1706_v42, 0.0 }
 0x514   : > { %v1672_v43 = vadd.f32 1e-05, %v1656_v15  ;;  %v1657_v61 = vmul.f32 0.00390625, %v1633_v49 }
 0x515   : > { %v1741_v18 = vmax.f32 %v1709_v4, 0.0  ;;  %v1740_v46 = vmax.f32 %v1708_v27, 0.0 }
 0x516   : > { %2617 = vrsqrt.f32 %v1672_v43  ;;  %v1673_v40 = vadd.f32 1e-05, %v1657_v61 }
 0x517   : > { %v1773_v50 = vpack.c.bf16 %v1741_v18, %v1739_v5  ;;  %v1772_v51 = vpack.c.bf16 %v1740_v46, %v1738_v26 }
 0x518   : > { %v2614_v10 = vpop.eup %2613  ;;  %2619 = vrsqrt.f32 %v1673_v40 }
 0x519   : > { %v1636_v17 = vpop.xlane.xlu0 %1635  ;;  %1812 = vmatprep.subr.bf16.mxu1 %v1773_v50  ;;  %v1711_v31 = vmul.f32 %v2614_v10, %v3862_v20  ;;  %v1710_v63 = vmul.f32 %v2614_v10, %v3859_v24 }
 0x51a   : > { %v2616_v22 = vpop.eup %2615  ;;  %v1658_v12 = vmul.f32 0.00390625, %v1636_v17  ;;  %1813 = vmatpush1.bf16.msra.mxu1 %v1772_v51  ;;  %v2527_v17 = vld [vmem:[#allocation5] sm:$0xff]  }
 0x51b   : > { %v1639_v7 = vpop.xlane.xlu1 %1638  ;;  %v1713_v19 = vmul.f32 %v2616_v22, %v3868_v13  ;;  %v1712_v38 = vmul.f32 %v2616_v22, %v3865_v44  ;;  %v1743_v59 = vmax.f32 %v1711_v31, 0.0  ;;  %v1742_v23 = vmax.f32 %v1710_v63, 0.0 }
 0x51c   : > { %v1674_v9 = vadd.f32 1e-05, %v1658_v12  ;;  %v1659_v56 = vmul.f32 0.00390625, %v1639_v7 }
 0x51d   : > { %v1745_v41 = vmax.f32 %v1713_v19, 0.0  ;;  %v1744_v8 = vmax.f32 %v1712_v38, 0.0 }
 0x51e   : > { %2621 = vrsqrt.f32 %v1674_v9  ;;  %v1675_v55 = vadd.f32 1e-05, %v1659_v56 }
 0x51f   : > { %v1775_v35 = vpack.c.bf16 %v1745_v41, %v1743_v59  ;;  %v1774_v20 = vpack.c.bf16 %v1744_v8, %v1742_v23 }
 0x520   : > { %v2618_v28 = vpop.eup %2617  ;;  %2623 = vrsqrt.f32 %v1675_v55 }
 0x521   : > { %v1642_v24 = vpop.xlane.xlu0 %1641  ;;  %1814 = vmatprep.subr.bf16.mxu1 %v1775_v35  ;;  %v1715_v58 = vmul.f32 %v2618_v28, %v3882_v37  ;;  %v1714_v13 = vmul.f32 %v2618_v28, %v3879_v21 }
 0x522   : > { %v2620_v11 = vpop.eup %2619  ;;  %v1660_v44 = vmul.f32 0.00390625, %v1642_v24  ;;  %1815 = vmatpush1.bf16.msra.mxu1 %v1774_v20 }
 0x523   : > { %v1645_v57 = vpop.xlane.xlu1 %1644  ;;  %v1717_v39 = vmul.f32 %v2620_v11, %v3888_v53  ;;  %v1716_v52 = vmul.f32 %v2620_v11, %v3885_v34  ;;  %v1747_v2 = vmax.f32 %v1715_v58, 0.0  ;;  %v1746_v6 = vmax.f32 %v1714_v13, 0.0 }
 0x524   : > { %v1676_v25 = vadd.f32 1e-05, %v1660_v44  ;;  %v1661_v0 = vmul.f32 0.00390625, %v1645_v57 }
 0x525   : > { %v1749_v14 = vmax.f32 %v1717_v39, 0.0  ;;  %v1748_v29 = vmax.f32 %v1716_v52, 0.0 }
 0x526   : > { %2625 = vrsqrt.f32 %v1676_v25  ;;  %v1677_v62 = vadd.f32 1e-05, %v1661_v0 }
 0x527   : > { %v1777_v30 = vpack.c.bf16 %v1749_v14, %v1747_v2  ;;  %v1776_v37 = vpack.c.bf16 %v1748_v29, %v1746_v6 }
 0x528   : > { %v2622_v54 = vpop.eup %2621  ;;  %2627 = vrsqrt.f32 %v1677_v62 }
 0x529   : > { %1816 = vmatprep.subr.bf16.mxu1 %v1777_v30  ;;  %v1719_v21 = vmul.f32 %v2622_v54, %v3902_v32  ;;  %v1718_v42 = vmul.f32 %v2622_v54, %v3899_v1 }
 0x52a   : > { %v2624_v53 = vpop.eup %2623  ;;  %1817 = vmatpush1.bf16.msra.mxu1 %v1776_v37 }
 0x52b   : > { %v1721_v34 = vmul.f32 %v2624_v53, %v3908_v45  ;;  %v1720_v60 = vmul.f32 %v2624_v53, %v3905_v3  ;;  %v1751_v15 = vmax.f32 %v1719_v21, 0.0  ;;  %v1750_v4 = vmax.f32 %v1718_v42, 0.0 }
 0x52d   : > { %v1753_v49 = vmax.f32 %v1721_v34, 0.0  ;;  %v1752_v27 = vmax.f32 %v1720_v60, 0.0 }
 0x52f   : > { %v1779_v43 = vpack.c.bf16 %v1753_v49, %v1751_v15  ;;  %v1778_v61 = vpack.c.bf16 %v1752_v27, %v1750_v4 }
 0x530   : > { %v2626_v5 = vpop.eup %2625 }
 0x531   : > { %1818 = vmatprep.subr.bf16.mxu1 %v1779_v43  ;;  %v1723_v18 = vmul.f32 %v2626_v5, %v3922_v16  ;;  %v1722_v32 = vmul.f32 %v2626_v5, %v3919_v33  ;;  %v2528_v16 = vld [vmem:[#allocation5 + $0x8] sm:$0xff]   ;;  %v2529_v33 = vld [vmem:[#allocation5 + $0x10] sm:$0xff]  }
 0x532   : > { %v2628_v26 = vpop.eup %2627  ;;  %1819 = vmatpush1.bf16.msra.mxu1 %v1778_v61 }
 0x533   : > { %v1725_v1 = vmul.f32 %v2628_v26, %v3928_v47  ;;  %v1724_v45 = vmul.f32 %v2628_v26, %v3925_v36  ;;  %v1755_v46 = vmax.f32 %v1723_v18, 0.0  ;;  %v1754_v40 = vmax.f32 %v1722_v32, 0.0  ;;  %v2530_v36 = vld [vmem:[#allocation5 + $0x18] sm:$0xff]  }
 0x535   : > { %v1757_v3 = vmax.f32 %v1725_v1, 0.0  ;;  %v1756_v50 = vmax.f32 %v1724_v45, 0.0 }
 0x537   : > { %v1781_v51 = vpack.c.bf16 %v1757_v3, %v1755_v46  ;;  %v1780_v10 = vpack.c.bf16 %v1756_v50, %v1754_v40 }
 0x539   : > { %1820 = vmatprep.subr.bf16.mxu1 %v1781_v51 }
 0x53a   : > { %1821 = vmatpush1.bf16.msra.mxu1 %v1780_v10 }
 0x53d   : > { %1839 = vmatmul.mubr.bf16.vlgmr.msra.gmra.mrb[32].mxu1 %v2527_v17 }
 0x53e   : > { %1848 = vmatprep.mubr.bf16.mxu1 %v4237_v48 }
 0x545   : > { %1849 = vmatmul.mubr.bf16.gmra.mrb[36].mxu1 %v2528_v16 }
 0x546   : > { %1858 = vmatprep.mubr.bf16.mxu1 %v4237_v48 }
 0x54d   : > { %1859 = vmatmul.mubr.bf16.gmra.mrb[40].mxu1 %v2529_v33 }
 0x54e   : > { %1868 = vmatprep.mubr.bf16.mxu1 %v4237_v48 }
 0x555   : > { %1869 = vmatmul.mubr.bf16.gmra.mrb[44].mxu1 %v2530_v36 }
 0x610   : > { %v1840_v47 = vpop.f32.mrb[32].mxu1 }
 0x611   : > { %v1842_v31 = vpop.f32.mrb[33].mxu1 }
 0x612   : > { %v1844_v63 = vpop.f32.mrb[34].mxu1  ;;  %v1879_v22 = vadd.f32 %v1842_v31, %v1840_v47 }
 0x613   : > { %v1846_v12 = vpop.f32.mrb[35].mxu1 }
 0x614   : > { %1880 = vadd.xlane.f32.xlu0 %v1879_v22  ;;  %v1882_v7 = vadd.f32 %v1846_v12, %v1844_v63 }
 0x616   : > { %1883 = vadd.xlane.f32.xlu1 %v1882_v7 }
 0x618   : > { %v1850_v19 = vpop.f32.mrb[36].mxu1 }
 0x619   : > { %v1852_v38 = vpop.f32.mrb[37].mxu1 }
 0x61a   : > { %v1885_v9 = vadd.f32 %v1852_v38, %v1850_v19  ;;  %v1854_v56 = vpop.f32.mrb[38].mxu1 }
 0x61b   : > { %v1856_v59 = vpop.f32.mrb[39].mxu1 }
 0x61c   : > { %v1888_v41 = vadd.f32 %v1856_v59, %v1854_v56  ;;  %1886 = vadd.xlane.f32.xlu0 %v1885_v9 }
 0x61e   : > { %1889 = vadd.xlane.f32.xlu1 %v1888_v41 }
 0x620   : > { %v1860_v23 = vpop.f32.mrb[40].mxu1 }
 0x621   : > { %v1862_v8 = vpop.f32.mrb[41].mxu1 }
 0x622   : > { %v1891_v55 = vadd.f32 %v1862_v8, %v1860_v23  ;;  %v1864_v35 = vpop.f32.mrb[42].mxu1 }
 0x623   : > { %v1866_v20 = vpop.f32.mrb[43].mxu1 }
 0x624   : > { %v1894_v28 = vadd.f32 %v1866_v20, %v1864_v35  ;;  %1892 = vadd.xlane.f32.xlu0 %v1891_v55 }
 0x626   : > { %1895 = vadd.xlane.f32.xlu1 %v1894_v28 }
 0x628   : > { %v1870_v24 = vpop.f32.mrb[44].mxu1 }
 0x629   : > { %v1872_v58 = vpop.f32.mrb[45].mxu1 }
 0x62a   : > { %v1897_v13 = vadd.f32 %v1872_v58, %v1870_v24  ;;  %v1874_v11 = vpop.f32.mrb[46].mxu1 }
 0x62b   : > { %v1876_v44 = vpop.f32.mrb[47].mxu1 }
 0x62c   : > { %v1900_v57 = vadd.f32 %v1876_v44, %v1874_v11  ;;  %1898 = vadd.xlane.f32.xlu0 %v1897_v13 }
 0x62e   : > { %1901 = vadd.xlane.f32.xlu1 %v1900_v57 }
 0x6a1   : > { %v1881_v39 = vpop.xlane.xlu0 %1880 }
 0x6a2   : > { %v1903_v52 = vmul.f32 0.00390625, %v1881_v39 }
 0x6a3   : > { %v1884_v25 = vpop.xlane.xlu1 %1883 }
 0x6a4   : > { %v3973_v0 = vsub.f32 %v1840_v47, %v1903_v52  ;;  %v3975_v2 = vsub.f32 %v1842_v31, %v1903_v52  ;;  %v1904_v14 = vmul.f32 0.00390625, %v1884_v25 }
 0x6a6   : > { %v1927_v6 = vmul.f32 %v3973_v0, %v3973_v0  ;;  %v1928_v29 = vmul.f32 %v3975_v2, %v3975_v2  ;;  %v3981_v62 = vsub.f32 %v1844_v63, %v1904_v14  ;;  %v3983_v30 = vsub.f32 %v1846_v12, %v1904_v14 }
 0x6a8   : > { %v1929_v37 = vmul.f32 %v3981_v62, %v3981_v62  ;;  %v1930_v54 = vmul.f32 %v3983_v30, %v3983_v30  ;;  %v1943_v21 = vadd.f32 %v1928_v29, %v1927_v6 }
 0x6a9   : > { %v1887_v42 = vpop.xlane.xlu0 %1886 }
 0x6aa   : > { %v1905_v53 = vmul.f32 0.00390625, %v1887_v42  ;;  %1944 = vadd.xlane.f32.xlu0 %v1943_v21  ;;  %v1946_v34 = vadd.f32 %v1930_v54, %v1929_v37 }
 0x6ab   : > { %v1890_v60 = vpop.xlane.xlu1 %1889 }
 0x6ac   : > { %v3989_v15 = vsub.f32 %v1850_v19, %v1905_v53  ;;  %v3991_v49 = vsub.f32 %v1852_v38, %v1905_v53  ;;  %v1906_v4 = vmul.f32 0.00390625, %v1890_v60  ;;  %1947 = vadd.xlane.f32.xlu1 %v1946_v34 }
 0x6ae   : > { %v1931_v27 = vmul.f32 %v3989_v15, %v3989_v15  ;;  %v1932_v43 = vmul.f32 %v3991_v49, %v3991_v49  ;;  %v3997_v61 = vsub.f32 %v1854_v56, %v1906_v4  ;;  %v3999_v5 = vsub.f32 %v1856_v59, %v1906_v4 }
 0x6b0   : > { %v1933_v18 = vmul.f32 %v3997_v61, %v3997_v61  ;;  %v1934_v32 = vmul.f32 %v3999_v5, %v3999_v5  ;;  %v1949_v26 = vadd.f32 %v1932_v43, %v1931_v27 }
 0x6b1   : > { %v1893_v1 = vpop.xlane.xlu0 %1892 }
 0x6b2   : > { %v1907_v45 = vmul.f32 0.00390625, %v1893_v1  ;;  %1950 = vadd.xlane.f32.xlu0 %v1949_v26  ;;  %v1952_v46 = vadd.f32 %v1934_v32, %v1933_v18 }
 0x6b3   : > { %v1896_v3 = vpop.xlane.xlu1 %1895 }
 0x6b4   : > { %v4005_v40 = vsub.f32 %v1860_v23, %v1907_v45  ;;  %v4007_v50 = vsub.f32 %v1862_v8, %v1907_v45  ;;  %v1908_v51 = vmul.f32 0.00390625, %v1896_v3  ;;  %1953 = vadd.xlane.f32.xlu1 %v1952_v46 }
 0x6b6   : > { %v1935_v10 = vmul.f32 %v4005_v40, %v4005_v40  ;;  %v1936_v17 = vmul.f32 %v4007_v50, %v4007_v50  ;;  %v4013_v16 = vsub.f32 %v1864_v35, %v1908_v51  ;;  %v4015_v33 = vsub.f32 %v1866_v20, %v1908_v51 }
 0x6b8   : > { %v1937_v36 = vmul.f32 %v4013_v16, %v4013_v16  ;;  %v1938_v47 = vmul.f32 %v4015_v33, %v4015_v33  ;;  %v1955_v31 = vadd.f32 %v1936_v17, %v1935_v10 }
 0x6b9   : > { %v1899_v63 = vpop.xlane.xlu0 %1898 }
 0x6ba   : > { %v1909_v22 = vmul.f32 0.00390625, %v1899_v63  ;;  %1956 = vadd.xlane.f32.xlu0 %v1955_v31  ;;  %v1958_v12 = vadd.f32 %v1938_v47, %v1937_v36 }
 0x6bb   : > { %v1902_v7 = vpop.xlane.xlu1 %1901 }
 0x6bc   : > { %v4021_v19 = vsub.f32 %v1870_v24, %v1909_v22  ;;  %v4023_v38 = vsub.f32 %v1872_v58, %v1909_v22  ;;  %v1910_v9 = vmul.f32 0.00390625, %v1902_v7  ;;  %1959 = vadd.xlane.f32.xlu1 %v1958_v12 }
 0x6be   : > { %v1939_v56 = vmul.f32 %v4021_v19, %v4021_v19  ;;  %v1940_v59 = vmul.f32 %v4023_v38, %v4023_v38  ;;  %v4029_v41 = vsub.f32 %v1874_v11, %v1910_v9  ;;  %v4031_v23 = vsub.f32 %v1876_v44, %v1910_v9 }
 0x6c0   : > { %v1941_v8 = vmul.f32 %v4029_v41, %v4029_v41  ;;  %v1942_v55 = vmul.f32 %v4031_v23, %v4031_v23  ;;  %v1961_v35 = vadd.f32 %v1940_v59, %v1939_v56 }
 0x6c2   : > { %1962 = vadd.xlane.f32.xlu0 %v1961_v35  ;;  %v1964_v20 = vadd.f32 %v1942_v55, %v1941_v8 }
 0x6c4   : > { %1965 = vadd.xlane.f32.xlu1 %v1964_v20 }
 0x737   : > { %v1945_v28 = vpop.xlane.xlu0 %1944 }
 0x738   : > { %v1967_v24 = vmul.f32 0.00390625, %v1945_v28 }
 0x739   : > { %v1948_v58 = vpop.xlane.xlu1 %1947 }
 0x73a   : > { %v1975_v13 = vadd.f32 1e-05, %v1967_v24  ;;  %v1968_v57 = vmul.f32 0.00390625, %v1948_v58 }
 0x73c   : > { %2629 = vrsqrt.f32 %v1975_v13  ;;  %v1976_v11 = vadd.f32 1e-05, %v1968_v57 }
 0x73e   : > { %2631 = vrsqrt.f32 %v1976_v11 }
 0x73f   : > { %v1951_v44 = vpop.xlane.xlu0 %1950 }
 0x740   : > { %v1969_v39 = vmul.f32 0.00390625, %v1951_v44 }
 0x741   : > { %v1954_v52 = vpop.xlane.xlu1 %1953 }
 0x742   : > { %v1977_v25 = vadd.f32 1e-05, %v1969_v39  ;;  %v1970_v14 = vmul.f32 0.00390625, %v1954_v52 }
 0x744   : > { %2633 = vrsqrt.f32 %v1977_v25  ;;  %v1978_v6 = vadd.f32 1e-05, %v1970_v14 }
 0x746   : > { %v2630_v29 = vpop.eup %2629  ;;  %2635 = vrsqrt.f32 %v1978_v6 }
 0x747   : > { %v1957_v37 = vpop.xlane.xlu0 %1956  ;;  %v1992_v54 = vmul.f32 %v2630_v29, %v3975_v2  ;;  %v1991_v21 = vmul.f32 %v2630_v29, %v3973_v0 }
 0x748   : > { %v2632_v42 = vpop.eup %2631  ;;  %v1971_v53 = vmul.f32 0.00390625, %v1957_v37  ;;  %v2531_v37 = vld [vmem:[%s4122_s4] sm:$0xff]  }
 0x749   : > { %v1960_v34 = vpop.xlane.xlu1 %1959  ;;  %v1994_v60 = vmul.f32 %v2632_v42, %v3983_v30  ;;  %v1993_v4 = vmul.f32 %v2632_v42, %v3981_v62  ;;  %v2008_v18 = vmax.f32 %v1992_v54, 0.0  ;;  %v2007_v26 = vmax.f32 %v1991_v21, 0.0 }
 0x74a   : > { %v1979_v27 = vadd.f32 1e-05, %v1971_v53  ;;  %v1972_v43 = vmul.f32 0.00390625, %v1960_v34 }
 0x74b   : > { %v2010_v32 = vmax.f32 %v1994_v60, 0.0  ;;  %v2009_v1 = vmax.f32 %v1993_v4, 0.0 }
 0x74c   : > { %2637 = vrsqrt.f32 %v1979_v27  ;;  %v1980_v45 = vadd.f32 1e-05, %v1972_v43 }
 0x74d   : > { %v2028_v46 = vpack.c.bf16 %v2010_v32, %v2008_v18  ;;  %v2027_v3 = vpack.c.bf16 %v2009_v1, %v2007_v26 }
 0x74e   : > { %v2634_v2 = vpop.eup %2633  ;;  %2639 = vrsqrt.f32 %v1980_v45 }
 0x74f   : > { %v1963_v0 = vpop.xlane.xlu0 %1962  ;;  %2052 = vmatprep.subr.bf16.mxu0 %v2028_v46  ;;  %v1996_v51 = vmul.f32 %v2634_v2, %v3991_v49  ;;  %v1995_v30 = vmul.f32 %v2634_v2, %v3989_v15 }
 0x750   : > { %v2636_v10 = vpop.eup %2635  ;;  %v1973_v62 = vmul.f32 0.00390625, %v1963_v0  ;;  %2053 = vmatpush1.bf16.msra.mxu0 %v2027_v3 }
 0x751   : > { %v1966_v17 = vpop.xlane.xlu1 %1965  ;;  %v1998_v36 = vmul.f32 %v2636_v10, %v3999_v5  ;;  %v1997_v47 = vmul.f32 %v2636_v10, %v3997_v61  ;;  %v2012_v22 = vmax.f32 %v1996_v51, 0.0  ;;  %v2011_v7 = vmax.f32 %v1995_v30, 0.0 }
 0x752   : > { %v1981_v31 = vadd.f32 1e-05, %v1973_v62  ;;  %v1974_v63 = vmul.f32 0.00390625, %v1966_v17 }
 0x753   : > { %v2014_v12 = vmax.f32 %v1998_v36, 0.0  ;;  %v2013_v9 = vmax.f32 %v1997_v47, 0.0 }
 0x754   : > { %2641 = vrsqrt.f32 %v1981_v31  ;;  %v1982_v56 = vadd.f32 1e-05, %v1974_v63 }
 0x755   : > { %v2030_v59 = vpack.c.bf16 %v2014_v12, %v2012_v22  ;;  %v2029_v49 = vpack.c.bf16 %v2013_v9, %v2011_v7 }
 0x756   : > { %v2638_v8 = vpop.eup %2637  ;;  %2643 = vrsqrt.f32 %v1982_v56 }
 0x757   : > { %2054 = vmatprep.subr.bf16.mxu0 %v2030_v59  ;;  %v2000_v15 = vmul.f32 %v2638_v8, %v4007_v50  ;;  %v1999_v55 = vmul.f32 %v2638_v8, %v4005_v40 }
 0x758   : > { %v2640_v5 = vpop.eup %2639  ;;  %2055 = vmatpush1.bf16.msra.mxu0 %v2029_v49 }
 0x759   : > { %v2002_v61 = vmul.f32 %v2640_v5, %v4015_v33  ;;  %v2001_v35 = vmul.f32 %v2640_v5, %v4013_v16  ;;  %v2016_v20 = vmax.f32 %v2000_v15, 0.0  ;;  %v2015_v24 = vmax.f32 %v1999_v55, 0.0 }
 0x75b   : > { %v2018_v28 = vmax.f32 %v2002_v61, 0.0  ;;  %v2017_v58 = vmax.f32 %v2001_v35, 0.0 }
 0x75d   : > { %v2032_v13 = vpack.c.bf16 %v2018_v28, %v2016_v20  ;;  %v2031_v57 = vpack.c.bf16 %v2017_v58, %v2015_v24 }
 0x75e   : > { %v2642_v11 = vpop.eup %2641 }
 0x75f   : > { %2056 = vmatprep.subr.bf16.mxu0 %v2032_v13  ;;  %v2004_v44 = vmul.f32 %v2642_v11, %v4023_v38  ;;  %v2003_v50 = vmul.f32 %v2642_v11, %v4021_v19  ;;  %v2532_v19 = vld [vmem:[%s4122_s4 + $0x8] sm:$0xff]  }
 0x760   : > { %v2644_v39 = vpop.eup %2643  ;;  %2057 = vmatpush1.bf16.msra.mxu0 %v2031_v57 }
 0x761   : > { %v2006_v40 = vmul.f32 %v2644_v39, %v4031_v23  ;;  %v2005_v33 = vmul.f32 %v2644_v39, %v4029_v41  ;;  %v2020_v52 = vmax.f32 %v2004_v44, 0.0  ;;  %v2019_v25 = vmax.f32 %v2003_v50, 0.0 }
 0x763   : > { %v2022_v16 = vmax.f32 %v2006_v40, 0.0  ;;  %v2021_v14 = vmax.f32 %v2005_v33, 0.0 }
 0x765   : > { %v2034_v6 = vpack.c.bf16 %v2022_v16, %v2020_v52  ;;  %v2033_v29 = vpack.c.bf16 %v2021_v14, %v2019_v25 }
 0x767   : > { %2058 = vmatprep.subr.bf16.mxu0 %v2034_v6 }
 0x768   : > { %2059 = vmatpush1.bf16.msra.mxu0 %v2033_v29 }
 0x76b   : > { %2416 = vmatmul.mubr.msk.bf16.vlgmr.msra.gmra.mrb[64].mxu0 %vm2045_vm2, %v2531_v37 }
 0x76c   : > { %2094 = vmatprep.mubr.bf16.mxu0 %v4237_v48 }
 0x773   : > { %2417 = vmatmul.mubr.msk.bf16.gmra.mrb[68].mxu0 %vm2045_vm2, %v2532_v19 }
 0x774   : > { %2218 = vmatprep.mubr.bf16.mxu0 %v4237_v48 }
 0x83e   : > { %v2086_v38 = vpop.f32.mrb[64].mxu0 }
 0x83f   : > { %v2088_v41 = vpop.f32.mrb[65].mxu0 }
 0x840   : > { %v2105_v23 = vadd.f32 %v2088_v41, %v2086_v38  ;;  %v2090_v54 = vpop.f32.mrb[66].mxu0 }
 0x841   : > { %v2092_v21 = vpop.f32.mrb[67].mxu0 }
 0x842   : > { %v2108_v42 = vadd.f32 %v2092_v21, %v2090_v54  ;;  %2106 = vadd.xlane.f32.xlu0 %v2105_v23 }
 0x844   : > { %2109 = vadd.xlane.f32.xlu1 %v2108_v42 }
 0x846   : > { %v2096_v53 = vpop.f32.mrb[68].mxu0 }
 0x847   : > { %v2098_v34 = vpop.f32.mrb[69].mxu0 }
 0x848   : > { %v2111_v60 = vadd.f32 %v2098_v34, %v2096_v53  ;;  %v2100_v4 = vpop.f32.mrb[70].mxu0 }
 0x849   : > { %v2102_v27 = vpop.f32.mrb[71].mxu0 }
 0x84a   : > { %v2114_v43 = vadd.f32 %v2102_v27, %v2100_v4  ;;  %2112 = vadd.xlane.f32.xlu0 %v2111_v60 }
 0x84c   : > { %2115 = vadd.xlane.f32.xlu1 %v2114_v43 }
 0x8cf   : > { %v2107_v18 = vpop.xlane.xlu0 %2106 }
 0x8d0   : > { %v2117_v32 = vmul.f32 0.00390625, %v2107_v18  ;;  %v2177_v18 = vld [vmem:[%s4123_s5] sm:$0x3] }
 0x8d1   : > { %v2110_v26 = vpop.xlane.xlu1 %2109 }
 0x8d2   : > { %v2121_v48 = vsub.f32 %v2086_v38, %v2117_v32  ;;  %v2122_v1 = vsub.f32 %v2088_v41, %v2117_v32  ;;  %v2118_v45 = vmul.f32 0.00390625, %v2110_v26 }
 0x8d4   : > { %v2129_v46 = vmul.f32 %v2121_v48, %v2121_v48  ;;  %v2130_v3 = vmul.f32 %v2122_v1, %v2122_v1  ;;  %v2123_v2 = vsub.f32 %v2090_v54, %v2118_v45  ;;  %v2124_v0 = vsub.f32 %v2092_v21, %v2118_v45 }
 0x8d6   : > { %v2131_v51 = vmul.f32 %v2123_v2, %v2123_v2  ;;  %v2132_v30 = vmul.f32 %v2124_v0, %v2124_v0  ;;  %v2137_v10 = vadd.f32 %v2130_v3, %v2129_v46 }
 0x8d7   : > { %v2113_v62 = vpop.xlane.xlu0 %2112 }
 0x8d8   : > { %v2119_v17 = vmul.f32 0.00390625, %v2113_v62  ;;  %2138 = vadd.xlane.f32.xlu0 %v2137_v10  ;;  %v2140_v36 = vadd.f32 %v2132_v30, %v2131_v51 }
 0x8d9   : > { %v2116_v47 = vpop.xlane.xlu1 %2115 }
 0x8da   : > { %v2125_v31 = vsub.f32 %v2096_v53, %v2119_v17  ;;  %v2126_v63 = vsub.f32 %v2098_v34, %v2119_v17  ;;  %v2120_v22 = vmul.f32 0.00390625, %v2116_v47  ;;  %2141 = vadd.xlane.f32.xlu1 %v2140_v36 }
 0x8dc   : > { %v2133_v12 = vmul.f32 %v2125_v31, %v2125_v31  ;;  %v2134_v7 = vmul.f32 %v2126_v63, %v2126_v63  ;;  %v2127_v9 = vsub.f32 %v2100_v4, %v2120_v22  ;;  %v2128_v56 = vsub.f32 %v2102_v27, %v2120_v22 }
 0x8de   : > { %v2135_v59 = vmul.f32 %v2127_v9, %v2127_v9  ;;  %v2136_v49 = vmul.f32 %v2128_v56, %v2128_v56  ;;  %v2143_v8 = vadd.f32 %v2134_v7, %v2133_v12 }
 0x8e0   : > { %2144 = vadd.xlane.f32.xlu0 %v2143_v8  ;;  %v2146_v15 = vadd.f32 %v2136_v49, %v2135_v59 }
 0x8e2   : > { %2147 = vadd.xlane.f32.xlu1 %v2146_v15 }
 0x965   : > { %v2139_v55 = vpop.xlane.xlu0 %2138 }
 0x966   : > { %v2149_v5 = vmul.f32 0.00390625, %v2139_v55 }
 0x967   : > { %v2142_v61 = vpop.xlane.xlu1 %2141 }
 0x968   : > { %v2153_v35 = vadd.f32 1e-05, %v2149_v5  ;;  %v2150_v20 = vmul.f32 0.00390625, %v2142_v61 }
 0x96a   : > { %2645 = vrsqrt.f32 %v2153_v35  ;;  %v2154_v28 = vadd.f32 1e-05, %v2150_v20 }
 0x96c   : > { %2647 = vrsqrt.f32 %v2154_v28 }
 0x96d   : > { %v2145_v24 = vpop.xlane.xlu0 %2144 }
 0x96e   : > { %v2151_v58 = vmul.f32 0.00390625, %v2145_v24 }
 0x96f   : > { %v2148_v13 = vpop.xlane.xlu1 %2147 }
 0x970   : > { %v2155_v57 = vadd.f32 1e-05, %v2151_v58  ;;  %v2152_v11 = vmul.f32 0.00390625, %v2148_v13 }
 0x972   : > { %2649 = vrsqrt.f32 %v2155_v57  ;;  %v2156_v44 = vadd.f32 1e-05, %v2152_v11 }
 0x974   : > { %v2646_v50 = vpop.eup %2645  ;;  %2651 = vrsqrt.f32 %v2156_v44 }
 0x975   : > { %v2162_v39 = vmul.f32 %v2646_v50, %v2122_v1  ;;  %v2161_v40 = vmul.f32 %v2646_v50, %v2121_v48 }
 0x976   : > { %v2648_v33 = vpop.eup %2647 }
 0x977   : > { %v2164_v52 = vmul.f32 %v2648_v33, %v2124_v0  ;;  %v2163_v16 = vmul.f32 %v2648_v33, %v2123_v2  ;;  %v2170_v25 = vmax.f32 %v2162_v39, 0.0  ;;  %v2169_v6 = vmax.f32 %v2161_v40, 0.0 }
 0x979   : > { %v2172_v14 = vmax.f32 %v2164_v52, 0.0  ;;  %v2171_v29 = vmax.f32 %v2163_v16, 0.0 }
 0x97b   : > { %v2179_v37 = vpack.c.bf16 %v2172_v14, %v2170_v25  ;;  %v2178_v19 = vpack.c.bf16 %v2171_v29, %v2169_v6 }
 0x97c   : > { %v2650_v38 = vpop.eup %2649 }
 0x97d   : > { %2186 = vmatprep.subr.bf16.mxu0 %v2179_v37  ;;  %v2166_v41 = vmul.f32 %v2650_v38, %v2126_v63  ;;  %v2165_v23 = vmul.f32 %v2650_v38, %v2125_v31 }
 0x97e   : > { %v2652_v54 = vpop.eup %2651  ;;  %2187 = vmatpush1.bf16.msra.mxu0 %v2178_v19 }
 0x97f   : > { %v2168_v21 = vmul.f32 %v2652_v54, %v2128_v56  ;;  %v2167_v42 = vmul.f32 %v2652_v54, %v2127_v9  ;;  %v2174_v53 = vmax.f32 %v2166_v41, 0.0  ;;  %v2173_v60 = vmax.f32 %v2165_v23, 0.0 }
 0x981   : > { %v2176_v34 = vmax.f32 %v2168_v21, 0.0  ;;  %v2175_v4 = vmax.f32 %v2167_v42, 0.0 }
 0x983   : > { %v2181_v27 = vpack.c.bf16 %v2176_v34, %v2174_v53  ;;  %v2180_v43 = vpack.c.bf16 %v2175_v4, %v2173_v60 }
 0x985   : > { %2188 = vmatprep.subr.bf16.mxu0 %v2181_v27 }
 0x986   : > { %2189 = vmatpush1.bf16.msra.mxu0 %v2180_v43 }
 0x989   : > { %2418 = vmatmul.mubr.msk.bf16.vlgmr.msra.gmra.mrb[72].mxu0 %vm2182_vm3, %v2177_v18 }
 0xa5c   : > { %v2220_v32 = vpop.f32.mrb[72].mxu0 }
 0xa5d   : > { %v2228_v26 = vsel %vm2227_vm4, %v2220_v32, 0.0  ;;  %v2222_v48 = vpop.f32.mrb[73].mxu0 }
 0xa5e   : > { %v2229_v1 = vsel %vm2227_vm4, %v2222_v48, 0.0  ;;  %v2224_v45 = vpop.f32.mrb[74].mxu0 }
 0xa5f   : > { %v2230_v46 = vadd.f32 %v2229_v1, %v2228_v26  ;;  %v2225_v3 = vpop.f32.mrb[75].mxu0 }
 0xa61   : > { %2231 = vadd.xlane.f32.xlu0 %v2230_v46 }
 0xaee   : > { %v2232_v2 = vpop.xlane.xlu0 %2231 }
 0xaef   : > { %v2233_v0 = vmul.f32 0.00390625, %v2232_v2 }
 0xaf1   : > { %v2234_v51 = vsub.f32 %v2220_v32, %v2233_v0  ;;  %v2235_v30 = vsub.f32 %v2222_v48, %v2233_v0 }
 0xaf3   : > { %v2236_v10 = vmul.f32 %v2234_v51, %v2234_v51  ;;  %v2237_v62 = vmul.f32 %v2235_v30, %v2235_v30 }
 0xaf5   : > { %v2238_v17 = vsel %vm2227_vm4, %v2236_v10, 0.0  ;;  %v2239_v36 = vsel %vm2227_vm4, %v2237_v62, 0.0 }
 0xaf6   : > { %v2240_v47 = vadd.f32 %v2239_v36, %v2238_v17 }
 0xaf8   : > { %2241 = vadd.xlane.f32.xlu1 %v2240_v47 }
 0xb85   : > { %v2242_v31 = vpop.xlane.xlu1 %2241 }
 0xb86   : > { %v2243_v63 = vmul.f32 0.00390625, %v2242_v31 }
 0xb88   : > { %v2244_v22 = vadd.f32 1e-05, %v2243_v63 }
 0xb8a   : > { %2653 = vrsqrt.f32 %v2244_v22 }
 0xb94   : > { %v2654_v12 = vpop.eup %2653 }
 0xb95   : > { %v2246_v7 = vmul.f32 %v2654_v12, %v2234_v51  ;;  %v2247_v9 = vmul.f32 %v2654_v12, %v2235_v30 }
 0xb97   : > { %v2248_v56 = vmax.f32 %v2246_v7, 0.0  ;;  %v2249_v59 = vmax.f32 %v2247_v9, 0.0 }
 0xb99   : > { %v2252_v49 = vcombine.low %v2248_v56, %v2249_v59 }
 0xb9b   : > { %2254 = vst [vmem:[%s282_s8] sm:$0x77] %v2252_v49 }
 0xb9c   : > { %2726 = shalt.err (!%p2723_p7)
}
 0xb9d   : > { %s2727_s26 = scalar_lea.hbm %s4074_s30, 128  ;;  %s2731_s10 = scalar_lea.hbm %s4124_s6, 256 }
 0xb9e   : > { %p2728_p9 = scmp.ne.s32.totalorder %s4074_s30, %s2727_s26  ;;  %p2732_p0 = scmp.lt.u32.totalorder %s4074_s30, %s4124_s6 }
 0xb9f   : > { %p2733_p11 = scmp.lt.u32.totalorder %s2731_s10, %s2727_s26  ;;  %p2735_p4 = scmp.lt.u32.totalorder %s2727_s26, %s4074_s30 }
 0xba0   : > { %p2729_p2 = pnand %p2728_p9, %p2917_p12 }
 0xba1   : > { %p2734_p1 = por %p2733_p11, %p2732_p0 }
 0xba2   : > { %p2730_p5 = pneg %p2729_p2 }
 0xba3   : > { %p2736_p6 = por %p2735_p4, %p2734_p1 }
 0xba5   : > { %p2737_p8 = pnand %p2736_p6, %p2730_p5 }
 0xba7   : > { %2740 = shalt.err (!%p2737_p8)
}
 0xba8   : > { %2432 = dma.vmem_to_hbm [thread:$0]  (%p2917_p12), %s4076_s15, 128, %s4074_s30, %s2256_s16  }
 0xba9 PF: > { %s2282_s8 = sand.u32 1, %s2771_s21   ;;  %p4238_p10 = scmp.ne.s32.totalorder %s4163_s28, 0 }
 0xbaa   : > { %p4239_p13 = scmp.ge.s32.totalorder %s2783_s24, 2  ;;  %s2283_s18 = scalar_lea.sflag [#allocation4], %s2282_s8 }
 0xbac   : > { %p2443_p3 = pnand %p4239_p13, %p4238_p10 }
 0xbae   : > { %2766 = dma.done.wait (!%p2443_p3), %s2283_s18, 128  }
 0xbaf   : > { %2768 = vsyncadd (!%p2443_p3), %s2283_s18, 4294967168  ;;  %p20_p7 = scmp.ge.s32.totalorder %s2882_s9, 4   ;;  %s4240_s21 = smov %s2775_s22 }
 0xbb0   : > { %s4241_s22 = smov %s2779_s23  ;;  %s4242_s23 = smov %s2913_s13 }
 0xbb1   : > { %s4243_s24 = smov %s2882_s9  ;;  %22 = sbr.rel (!%p20_p7) target bundleno = 6 (0x6), region = 93 }
 0xbb8   :  { %2288 = vsyncpa [#allocation3], 1 }
 0xbb9   :  { %2290 = vsyncpa [#allocation3 + $0x1], 1 }
 0xbba   :  { %2291 = vsyncpa [#allocation6], 1 }
 0xbbb   :  { %2292 = vsyncpa [#allocation4], 1 }
 0xbbc   :  { %2294 = vsyncpa [#allocation4 + $0x1], 1 }

</bundles_post_ra>
